<compile_context>
chip_gen: v6e
topology: v6e:2x2x1
jax: 0.10.0
libtpu: 0.0.40
codegen_flags: <defaults>
</compile_context>

<pallas_src>
import functools

import numpy as np
import jax
import jax.numpy as jnp
from jax import lax
from jax.experimental import pallas as pl
from jax.experimental.pallas import tpu as pltpu

_VMEM_LIMIT = 48 * 1024 * 1024


# --------------------------------------------------------------------------
# Shared in-kernel helpers (f32 math)
# --------------------------------------------------------------------------

def _layernorm(x, g, b, eps=1e-5):
    mu = jnp.mean(x, axis=-1, keepdims=True)
    var = jnp.mean(jnp.square(x - mu), axis=-1, keepdims=True)
    return (x - mu) * lax.rsqrt(var + eps) * g + b


# --------------------------------------------------------------------------
# Kernel A: transformer stack, grid = (batch [parallel], layer [arbitrary])
# --------------------------------------------------------------------------

def _transformer_layer_kernel(*refs, num_heads, num_layers, has_final):
    (x_ref, wqkv_ref, bqkv_ref, wo_ref, bo_ref,
     ff1_w_ref, ff1_b_ref, ff2_w_ref, ff2_b_ref,
     ln1_g_ref, ln1_b_ref, ln2_g_ref, ln2_b_ref) = refs[:13]
    if has_final:
        fin_w_ref, fin_b_ref = refs[13], refs[14]
        o_ref, x_scr = refs[15], refs[16]
    else:
        o_ref, x_scr = refs[13], refs[14]

    layer = pl.program_id(1)
    S, E = x_scr.shape
    H = num_heads
    Dh = E // H
    scale = 1.0 / float(np.sqrt(Dh))

    # Load this batch element's activations into the resident VMEM state.
    @pl.when(layer == 0)
    def _():
        x_scr[...] = x_ref[...]

    x = x_scr[...]                                            # (S, E) f32
    xb = x.astype(jnp.bfloat16)

    # Fused QKV projection: one lane-dense (E, 3E) matmul.
    qkv = (jnp.dot(xb, wqkv_ref[...], preferred_element_type=jnp.float32)
           + bqkv_ref[...])                                   # (S, 3E) f32

    # Per-head attention (static unroll); exact softmax in f32.
    head_outs = []
    for h in range(H):
        q_h = qkv[:, h * Dh:(h + 1) * Dh].astype(jnp.bfloat16)
        k_h = qkv[:, E + h * Dh:E + (h + 1) * Dh].astype(jnp.bfloat16)
        v_h = qkv[:, 2 * E + h * Dh:2 * E + (h + 1) * Dh].astype(jnp.bfloat16)
        s = lax.dot_general(q_h, k_h, (((1,), (1,)), ((), ())),
                            preferred_element_type=jnp.float32) * scale
        s = s - jnp.max(s, axis=-1, keepdims=True)
        p = jnp.exp(s)
        p = p / jnp.sum(p, axis=-1, keepdims=True)
        head_outs.append(jnp.dot(p.astype(jnp.bfloat16), v_h,
                                 preferred_element_type=jnp.float32))
    attn_cat = jnp.concatenate(head_outs, axis=-1)            # (S, E)

    # Merged (E, E) out-projection + residual + LN.
    attn = (jnp.dot(attn_cat.astype(jnp.bfloat16), wo_ref[...],
                    preferred_element_type=jnp.float32) + bo_ref[...])
    x1 = _layernorm(x + attn, ln1_g_ref[...], ln1_b_ref[...])

    # Feed-forward + residual + LN.
    hid = jnp.maximum(
        jnp.dot(x1.astype(jnp.bfloat16), ff1_w_ref[...],
                preferred_element_type=jnp.float32) + ff1_b_ref[...], 0.0)
    ffn = (jnp.dot(hid.astype(jnp.bfloat16), ff2_w_ref[...],
                   preferred_element_type=jnp.float32) + ff2_b_ref[...])
    x_new = _layernorm(x1 + ffn, ln2_g_ref[...], ln2_b_ref[...])
    x_scr[...] = x_new

    # Write HBM output only once, at the last layer (mel head fused in).
    @pl.when(layer == num_layers - 1)
    def _():
        if has_final:
            o_ref[...] = (jnp.dot(x_new.astype(jnp.bfloat16), fin_w_ref[...],
                                  preferred_element_type=jnp.float32)
                          + fin_b_ref[...])
        else:
            o_ref[...] = x_new


def transformer_stack(x, stack, *, num_heads, final_w=None, final_b=None):
    B, S, E = x.shape
    L = int(stack["wqkv"].shape[0])
    dff = int(stack["ff1_w"].shape[-1])
    has_final = final_w is not None
    out_dim = int(final_w.shape[-1]) if has_final else E

    xmap = lambda b, l: (b, 0, 0)          # activation / output blocks
    wmap = lambda b, l: (l, 0, 0)          # per-layer weight blocks
    cmap = lambda b, l: (0, 0)             # layer-independent (final head)

    in_specs = [
        pl.BlockSpec((None, S, E), xmap),
        pl.BlockSpec((None, E, 3 * E), wmap),     # wqkv
        pl.BlockSpec((None, 1, 3 * E), wmap),     # bqkv
        pl.BlockSpec((None, E, E), wmap),         # wo
        pl.BlockSpec((None, 1, E), wmap),         # bo
        pl.BlockSpec((None, E, dff), wmap),       # ff1_w
        pl.BlockSpec((None, 1, dff), wmap),       # ff1_b
        pl.BlockSpec((None, dff, E), wmap),       # ff2_w
        pl.BlockSpec((None, 1, E), wmap),         # ff2_b
        pl.BlockSpec((None, 1, E), wmap),         # ln1_g
        pl.BlockSpec((None, 1, E), wmap),         # ln1_b
        pl.BlockSpec((None, 1, E), wmap),         # ln2_g
        pl.BlockSpec((None, 1, E), wmap),         # ln2_b
    ]
    args = [x, stack["wqkv"], stack["bqkv"], stack["wo"], stack["bo"],
            stack["ff1_w"], stack["ff1_b"], stack["ff2_w"], stack["ff2_b"],
            stack["ln1_g"], stack["ln1_b"], stack["ln2_g"], stack["ln2_b"]]
    if has_final:
        in_specs += [pl.BlockSpec((E, out_dim), cmap),
                     pl.BlockSpec((1, out_dim), cmap)]
        args += [final_w, final_b]

    flops = B * L * (2 * S * E * 3 * E          # fused QKV
                     + 4 * S * S * E            # scores + p@v
                     + 2 * S * E * E            # out projection
                     + 4 * S * E * dff)         # feed-forward
    if has_final:
        flops += 2 * B * S * E * out_dim
    transcendentals = B * L * (num_heads * S * S + 4 * S)
    bytes_accessed = (sum(int(np.prod(a.shape)) * a.dtype.itemsize
                          for a in args) + B * S * out_dim * 4)

    return pl.pallas_call(
        functools.partial(_transformer_layer_kernel, num_heads=num_heads,
                          num_layers=L, has_final=has_final),
        out_shape=jax.ShapeDtypeStruct((B, S, out_dim), jnp.float32),
        grid_spec=pltpu.PrefetchScalarGridSpec(
            num_scalar_prefetch=0,
            grid=(B, L),
            in_specs=in_specs,
            out_specs=pl.BlockSpec((None, S, out_dim), xmap),
            scratch_shapes=[pltpu.VMEM((S, E), jnp.float32)]),
        compiler_params=pltpu.CompilerParams(
            dimension_semantics=("parallel", "arbitrary"),
            vmem_limit_bytes=_VMEM_LIMIT),
        cost_estimate=pl.CostEstimate(flops=int(flops),
                                      transcendentals=int(transcendentals),
                                      bytes_accessed=int(bytes_accessed)),
    )(*args)


# --------------------------------------------------------------------------
# Kernel B: speaker conditioning + full DurationPredictor, fused
# --------------------------------------------------------------------------

def _spk_duration_kernel(enc_ref, spk_ref, spk_w_ref, spk_b_ref,
                         c1_w_ref, c1_b_ref, ln1_g_ref, ln1_b_ref,
                         c2_w_ref, c2_b_ref, ln2_g_ref, ln2_b_ref,
                         lin_w_ref, lin_b_ref,
                         enc_out_ref, dur_ref, *, ksize):
    B, S, E = enc_ref.shape
    pad = ksize // 2

    # Speaker projection + broadcast-add conditioning (no bcast matmul).
    spk = (jnp.dot(spk_ref[...].astype(jnp.bfloat16), spk_w_ref[...],
                   preferred_element_type=jnp.float32) + spk_b_ref[...])  # (B,E)
    enc = enc_ref[...] + spk[:, None, :]                                  # (B,S,E)
    enc_out_ref[...] = enc

    def shift_rows(x3, off):
        # y[:, s, :] = x3[:, s + off, :], zero padded (per-batch, so there is
        # no cross-batch leakage -> matches 'same' Conv1d padding).
        if off == 0:
            return x3
        b_, s_, c_ = x3.shape
        z = jnp.zeros((b_, abs(off), c_), x3.dtype)
        if off > 0:
            return jnp.concatenate([x3[:, off:, :], z], axis=1)
        return jnp.concatenate([z, x3[:, :s_ + off, :]], axis=1)

    def conv_relu(x3, w_ref, b_ref):
        cin = x3.shape[-1]
        cout = b_ref.shape[-1]
        acc = jnp.zeros((B * S, cout), jnp.float32)
        for kk in range(ksize):                               # static unroll
            xs = shift_rows(x3, kk - pad).reshape(B * S, cin)
            acc = acc + jnp.dot(xs.astype(jnp.bfloat16), w_ref[kk],
                                preferred_element_type=jnp.float32)
        return jnp.maximum(acc + b_ref[...], 0.0)

    h = conv_relu(enc, c1_w_ref, c1_b_ref)                    # (BS, F)
    h = _layernorm(h, ln1_g_ref[...], ln1_b_ref[...])
    h = conv_relu(h.reshape(B, S, -1), c2_w_ref, c2_b_ref)
    h = _layernorm(h, ln2_g_ref[...], ln2_b_ref[...])

    # Final Linear(F -> 1) as a lane reduction, then relu(x) + 1,
    # stored as a (B, S) layout (no (BS, 1) column-vector store).
    h3 = h.reshape(B, S, -1)
    d = jnp.sum(h3 * lin_w_ref[...], axis=-1) + lin_b_ref[...]          # (B,S)
    dur_ref[...] = jnp.maximum(d, 0.0) + 1.0


def speaker_and_duration(enc, spk_emb, params):
    B, S, E = enc.shape
    dp = params["dp"]
    F = int(dp["conv1_b"].shape[-1])
    K = int(dp["conv1_w"].shape[0])
    Dspk = int(spk_emb.shape[-1])

    args = [enc, spk_emb, params["spk_proj_w"], params["spk_proj_b"],
            dp["conv1_w"], dp["conv1_b"], dp["ln1_g"], dp["ln1_b"],
            dp["conv2_w"], dp["conv2_b"], dp["ln2_g"], dp["ln2_b"],
            dp["lin_w"], dp["lin_b"]]

    flops = (2 * B * Dspk * E
             + K * (2 * B * S * E * F + 2 * B * S * F * F)
             + 2 * B * S * F)
    bytes_accessed = (sum(int(np.prod(a.shape)) * a.dtype.itemsize
                          for a in args) + B * S * E * 4 + B * S * 4)

    return pl.pallas_call(
        functools.partial(_spk_duration_kernel, ksize=K),
        out_shape=(jax.ShapeDtypeStruct((B, S, E), jnp.float32),
                   jax.ShapeDtypeStruct((B, S), jnp.float32)),
        compiler_params=pltpu.CompilerParams(vmem_limit_bytes=_VMEM_LIMIT),
        cost_estimate=pl.CostEstimate(flops=int(flops),
                                      transcendentals=4 * B * S,
                                      bytes_accessed=int(bytes_accessed)),
    )(*args)


# --------------------------------------------------------------------------
# Host-side length regulator (data-dependent output length, mirrors .item())
# --------------------------------------------------------------------------

def length_regulator(enc_np, dur_np, embed_dim):
    outs = []
    B, S, _ = enc_np.shape
    for i in range(B):
        rows = []
        for j in range(S):
            r = int(round(float(dur_np[i, j])))
            rows.append(np.repeat(enc_np[i, j:j + 1, :], r, axis=0))
        o = (np.concatenate(rows, axis=0) if rows
             else np.zeros((1, embed_dim), np.float32))
        outs.append(o)
    max_len = max(o.shape[0] for o in outs)
    padded = [np.pad(o, ((0, max_len - o.shape[0]), (0, 0))) for o in outs]
    return np.stack(padded).astype(np.float32), max_len


# --------------------------------------------------------------------------
# Parameter construction (weights cast to bf16 once, biases/LN params f32)
# --------------------------------------------------------------------------

def init_params(key, vocab_size, embed_dim, n_mels, num_speakers, spk_dim,
                n_enc_layers, n_dec_layers, num_heads, dim_ff=2048,
                filter_size=256, ksize=3):
    keys = iter(jax.random.split(key, 256))
    E = embed_dim

    def nrm(shape, scale=0.02, dtype=jnp.bfloat16):
        return (scale * jax.random.normal(next(keys), shape)).astype(dtype)

    def stack_params(L):
        return dict(
            wqkv=nrm((L, E, 3 * E)),
            bqkv=jnp.zeros((L, 1, 3 * E), jnp.float32),
            wo=nrm((L, E, E)),
            bo=jnp.zeros((L, 1, E), jnp.float32),
            ff1_w=nrm((L, E, dim_ff)),
            ff1_b=jnp.zeros((L, 1, dim_ff), jnp.float32),
            ff2_w=nrm((L, dim_ff, E)),
            ff2_b=jnp.zeros((L, 1, E), jnp.float32),
            ln1_g=jnp.ones((L, 1, E), jnp.float32),
            ln1_b=jnp.zeros((L, 1, E), jnp.float32),
            ln2_g=jnp.ones((L, 1, E), jnp.float32),
            ln2_b=jnp.zeros((L, 1, E), jnp.float32),
        )

    emb = (0.1 * jax.random.normal(next(keys), (vocab_size, E))
           ).astype(jnp.float32)
    emb = emb.at[0].set(0.0)                                  # padding_idx=0

    return dict(
        embedding=emb,
        enc_stack=stack_params(n_enc_layers),
        dec_stack=stack_params(n_dec_layers),
        speaker_embedding=(0.1 * jax.random.normal(
            next(keys), (num_speakers, spk_dim))).astype(jnp.float32),
        spk_proj_w=nrm((spk_dim, E)),
        spk_proj_b=jnp.zeros((1, E), jnp.float32),
        dp=dict(
            conv1_w=nrm((ksize, E, filter_size)),
            conv1_b=jnp.zeros((1, filter_size), jnp.float32),
            ln1_g=jnp.ones((1, filter_size), jnp.float32),
            ln1_b=jnp.zeros((1, filter_size), jnp.float32),
            conv2_w=nrm((ksize, filter_size, filter_size)),
            conv2_b=jnp.zeros((1, filter_size), jnp.float32),
            ln2_g=jnp.ones((1, filter_size), jnp.float32),
            ln2_b=jnp.zeros((1, filter_size), jnp.float32),
            lin_w=nrm((1, 1, filter_size), dtype=jnp.float32),
            lin_b=jnp.zeros((1, 1), jnp.float32),
        ),
        mel_w=nrm((E, n_mels)),
        mel_b=jnp.zeros((1, n_mels), jnp.float32),
    )


# --------------------------------------------------------------------------
# Full forward pass
# --------------------------------------------------------------------------

def fastspeech2_forward(params, text_input, speaker_ids, *, num_heads,
                        embed_dim, n_mels):
    B, S = text_input.shape

    # TextEncoder: embedding gather (XLA) + fused transformer stack.
    emb = params["embedding"][text_input] * float(np.sqrt(embed_dim))   # (B,S,E)
    enc = transformer_stack(emb, params["enc_stack"], num_heads=num_heads)

    # Speaker conditioning + DurationPredictor (single fused kernel).
    spk_emb = params["speaker_embedding"][speaker_ids]                  # (B,Dspk)
    enc_cond, durations = speaker_and_duration(enc, spk_emb, params)

    # LengthRegulator (data-dependent output length -> host, matches .item()).
    enc_np = np.asarray(jax.device_get(enc_cond))
    dur_np = np.asarray(jax.device_get(durations))
    regulated_np, _ = length_regulator(enc_np, dur_np, embed_dim)

    # MelDecoder: fused transformer stack with the mel head folded in.
    reg = jnp.asarray(regulated_np)                                     # (B,T,E)
    mel = transformer_stack(reg, params["dec_stack"], num_heads=num_heads,
                            final_w=params["mel_w"], final_b=params["mel_b"])
    mel = mel.transpose(0, 2, 1)                                        # (B,n_mels,T)
    return mel, durations


# --------------------------------------------------------------------------
# Main
# --------------------------------------------------------------------------

if __name__ == "__main__":
    vocab_size, embed_dim, n_mels = 40, 32, 16
    num_speakers, spk_dim = 4, 8
    num_heads = 4
    n_enc_layers, n_dec_layers = 2, 2
    B, S = 2, 8

    key = jax.random.PRNGKey(0)
    pkey, tkey, skey = jax.random.split(key, 3)
    params = init_params(pkey, vocab_size, embed_dim, n_mels, num_speakers,
                         spk_dim, n_enc_layers, n_dec_layers, num_heads)

    text_input = jax.random.randint(tkey, (B, S), 1, vocab_size, dtype=jnp.int32)
    speaker_ids = jax.random.randint(skey, (B,), 0, num_speakers, dtype=jnp.int32)

    mel_output, durations = fastspeech2_forward(
        params, text_input, speaker_ids,
        num_heads=num_heads, embed_dim=embed_dim, n_mels=n_mels)
    mel_output = jax.block_until_ready(mel_output)
    durations = jax.block_until_ready(durations)

    dur_np = np.asarray(durations)
    expected_T = int(max(int(np.round(dur_np[i]).sum()) for i in range(B)))

    assert mel_output.shape == (B, n_mels, expected_T)
    assert durations.shape == (B, S)
    assert bool(jnp.all(durations >= 1.0))
    assert np.isfinite(np.asarray(mel_output)).all()

    print("KERNEL_OK")
</pallas_src>

<mosaic_0001>
module attributes {stable_mosaic.version = 11 : i64} {
  func.func @_transformer_layer_kernel(%arg0: i32, %arg1: i32, %arg2: memref<1x8x32xf32, #tpu.memory_space<vmem>>, %arg3: memref<1x32x96xbf16, #tpu.memory_space<vmem>>, %arg4: memref<1x1x96xf32, #tpu.memory_space<vmem>>, %arg5: memref<1x32x32xbf16, #tpu.memory_space<vmem>>, %arg6: memref<1x1x32xf32, #tpu.memory_space<vmem>>, %arg7: memref<1x32x2048xbf16, #tpu.memory_space<vmem>>, %arg8: memref<1x1x2048xf32, #tpu.memory_space<vmem>>, %arg9: memref<1x2048x32xbf16, #tpu.memory_space<vmem>>, %arg10: memref<1x1x32xf32, #tpu.memory_space<vmem>>, %arg11: memref<1x1x32xf32, #tpu.memory_space<vmem>>, %arg12: memref<1x1x32xf32, #tpu.memory_space<vmem>>, %arg13: memref<1x1x32xf32, #tpu.memory_space<vmem>>, %arg14: memref<1x1x32xf32, #tpu.memory_space<vmem>>, %arg15: memref<1x8x32xf32, #tpu.memory_space<vmem>>, %arg16: memref<8x32xf32, #tpu.memory_space<vmem>>) attributes {dimension_semantics = [#tpu.dimension_semantics<parallel>, #tpu.dimension_semantics<arbitrary>], iteration_bounds = array<i64: 2, 2>, scalar_prefetch = 0 : i64, scratch_operands = 1 : i64, tpu.core_type = #tpu.core_type<tc>, window_params = [{transform_indices = @transform_0, window_bounds = array<i64: 1, 8, 32>}, {transform_indices = @transform_1, window_bounds = array<i64: 1, 32, 96>}, {transform_indices = @transform_2, window_bounds = array<i64: 1, 1, 96>}, {transform_indices = @transform_3, window_bounds = array<i64: 1, 32, 32>}, {transform_indices = @transform_4, window_bounds = array<i64: 1, 1, 32>}, {transform_indices = @transform_5, window_bounds = array<i64: 1, 32, 2048>}, {transform_indices = @transform_6, window_bounds = array<i64: 1, 1, 2048>}, {transform_indices = @transform_7, window_bounds = array<i64: 1, 2048, 32>}, {transform_indices = @transform_8, window_bounds = array<i64: 1, 1, 32>}, {transform_indices = @transform_9, window_bounds = array<i64: 1, 1, 32>}, {transform_indices = @transform_10, window_bounds = array<i64: 1, 1, 32>}, {transform_indices = @transform_11, window_bounds = array<i64: 1, 1, 32>}, {transform_indices = @transform_12, window_bounds = array<i64: 1, 1, 32>}, {transform_indices = @transform_13, window_bounds = array<i64: 1, 8, 32>}]} {
    %c0_i32 = arith.constant 0 : i32
    %0 = arith.cmpi eq, %arg1, %c0_i32 : i32
    %1 = arith.extui %0 : i1 to i32
    %c0_i32_0 = arith.constant 0 : i32
    %2 = arith.cmpi ne, %1, %c0_i32_0 : i32
    scf.if %2 {
      %c0_75 = arith.constant 0 : index
      %c0_76 = arith.constant 0 : index
      %c0_77 = arith.constant 0 : index
      %177 = vector.load %arg2[%c0_75, %c0_76, %c0_77] : memref<1x8x32xf32, #tpu.memory_space<vmem>>, vector<1x8x32xf32>
      %178 = vector.shape_cast %177 : vector<1x8x32xf32> to vector<8x32xf32>
      %c0_78 = arith.constant 0 : index
      %c0_79 = arith.constant 0 : index
      %179 = vector.load %arg16[%c0_78, %c0_79] : memref<8x32xf32, #tpu.memory_space<vmem>>, vector<8x32xf32>
      tpu.vector_store %arg16[%c0_78, %c0_79], %178 {strides = array<i32>} : memref<8x32xf32, #tpu.memory_space<vmem>>, vector<8x32xf32>,
    } else {
    }
    %c0 = arith.constant 0 : index
    %c0_1 = arith.constant 0 : index
    %3 = vector.load %arg16[%c0, %c0_1] : memref<8x32xf32, #tpu.memory_space<vmem>>, vector<8x32xf32>
    %4 = arith.truncf %3 : vector<8x32xf32> to vector<8x32xbf16>
    %c0_2 = arith.constant 0 : index
    %c0_3 = arith.constant 0 : index
    %c0_4 = arith.constant 0 : index
    %5 = vector.load %arg3[%c0_2, %c0_3, %c0_4] : memref<1x32x96xbf16, #tpu.memory_space<vmem>>, vector<1x32x96xbf16>
    %6 = vector.shape_cast %5 : vector<1x32x96xbf16> to vector<32x96xbf16>
    %cst = arith.constant dense<0.000000e+00> : vector<8x96xf32>
    %7 = tpu.matmul %4, %6, %cst {dimension_numbers = #tpu.dot_dimension_numbers<[1], [0], [0], [1], [0, 0, 1, 1], [], []>} : vector<8x32xbf16>, vector<32x96xbf16>, vector<8x96xf32> -> vector<8x96xf32>
    %c0_5 = arith.constant 0 : index
    %c0_6 = arith.constant 0 : index
    %c0_7 = arith.constant 0 : index
    %8 = vector.load %arg4[%c0_5, %c0_6, %c0_7] : memref<1x1x96xf32, #tpu.memory_space<vmem>>, vector<1x1x96xf32>
    %9 = vector.shape_cast %8 : vector<1x1x96xf32> to vector<1x96xf32>
    %10 = vector.broadcast %9 : vector<1x96xf32> to vector<8x96xf32>
    %11 = arith.addf %7, %10 : vector<8x96xf32>
    %12 = vector.extract_strided_slice %11 {offsets = [0, 0], sizes = [8, 8], strides = [1, 1]} : vector<8x96xf32> to vector<8x8xf32>
    %13 = arith.truncf %12 : vector<8x8xf32> to vector<8x8xbf16>
    %14 = vector.extract_strided_slice %11 {offsets = [0, 32], sizes = [8, 8], strides = [1, 1]} : vector<8x96xf32> to vector<8x8xf32>
    %15 = arith.truncf %14 : vector<8x8xf32> to vector<8x8xbf16>
    %16 = vector.extract_strided_slice %11 {offsets = [0, 64], sizes = [8, 8], strides = [1, 1]} : vector<8x96xf32> to vector<8x8xf32>
    %17 = arith.truncf %16 : vector<8x8xf32> to vector<8x8xbf16>
    %cst_8 = arith.constant dense<0.000000e+00> : vector<8x8xf32>
    %18 = tpu.matmul %13, %15, %cst_8 {dimension_numbers = #tpu.dot_dimension_numbers<[1], [1], [0], [0], [0, 0, 1, 0], [], []>} : vector<8x8xbf16>, vector<8x8xbf16>, vector<8x8xf32> -> vector<8x8xf32>
    %cst_9 = arith.constant 0.353553385 : f32
    %19 = vector.broadcast %cst_9 : f32 to vector<8x8xf32>
    %20 = arith.mulf %18, %19 : vector<8x8xf32>
    %cst_10 = arith.constant dense<0xFF800000> : vector<8xf32>
    %21 = vector.multi_reduction <maximumf>, %20, %cst_10 [1] : vector<8x8xf32> to vector<8xf32>
    %22 = vector.shape_cast %21 : vector<8xf32> to vector<8x1xf32>
    %23 = vector.broadcast %22 : vector<8x1xf32> to vector<8x8xf32>
    %24 = arith.subf %20, %23 : vector<8x8xf32>
    %25 = math.exp %24 : vector<8x8xf32>
    %cst_11 = arith.constant dense<0.000000e+00> : vector<8xf32>
    %26 = vector.multi_reduction <add>, %25, %cst_11 [1] : vector<8x8xf32> to vector<8xf32>
    %27 = vector.shape_cast %26 : vector<8xf32> to vector<8x1xf32>
    %28 = vector.broadcast %27 : vector<8x1xf32> to vector<8x8xf32>
    %29 = arith.divf %25, %28 : vector<8x8xf32>
    %30 = arith.truncf %29 : vector<8x8xf32> to vector<8x8xbf16>
    %cst_12 = arith.constant dense<0.000000e+00> : vector<8x8xf32>
    %31 = tpu.matmul %30, %17, %cst_12 {dimension_numbers = #tpu.dot_dimension_numbers<[1], [0], [0], [1], [0, 0, 1, 1], [], []>} : vector<8x8xbf16>, vector<8x8xbf16>, vector<8x8xf32> -> vector<8x8xf32>
    %32 = vector.extract_strided_slice %11 {offsets = [0, 8], sizes = [8, 8], strides = [1, 1]} : vector<8x96xf32> to vector<8x8xf32>
    %33 = arith.truncf %32 : vector<8x8xf32> to vector<8x8xbf16>
    %34 = vector.extract_strided_slice %11 {offsets = [0, 40], sizes = [8, 8], strides = [1, 1]} : vector<8x96xf32> to vector<8x8xf32>
    %35 = arith.truncf %34 : vector<8x8xf32> to vector<8x8xbf16>
    %36 = vector.extract_strided_slice %11 {offsets = [0, 72], sizes = [8, 8], strides = [1, 1]} : vector<8x96xf32> to vector<8x8xf32>
    %37 = arith.truncf %36 : vector<8x8xf32> to vector<8x8xbf16>
    %cst_13 = arith.constant dense<0.000000e+00> : vector<8x8xf32>
    %38 = tpu.matmul %33, %35, %cst_13 {dimension_numbers = #tpu.dot_dimension_numbers<[1], [1], [0], [0], [0, 0, 1, 0], [], []>} : vector<8x8xbf16>, vector<8x8xbf16>, vector<8x8xf32> -> vector<8x8xf32>
    %cst_14 = arith.constant 0.353553385 : f32
    %39 = vector.broadcast %cst_14 : f32 to vector<8x8xf32>
    %40 = arith.mulf %38, %39 : vector<8x8xf32>
    %cst_15 = arith.constant dense<0xFF800000> : vector<8xf32>
    %41 = vector.multi_reduction <maximumf>, %40, %cst_15 [1] : vector<8x8xf32> to vector<8xf32>
    %42 = vector.shape_cast %41 : vector<8xf32> to vector<8x1xf32>
    %43 = vector.broadcast %42 : vector<8x1xf32> to vector<8x8xf32>
    %44 = arith.subf %40, %43 : vector<8x8xf32>
    %45 = math.exp %44 : vector<8x8xf32>
    %cst_16 = arith.constant dense<0.000000e+00> : vector<8xf32>
    %46 = vector.multi_reduction <add>, %45, %cst_16 [1] : vector<8x8xf32> to vector<8xf32>
    %47 = vector.shape_cast %46 : vector<8xf32> to vector<8x1xf32>
    %48 = vector.broadcast %47 : vector<8x1xf32> to vector<8x8xf32>
    %49 = arith.divf %45, %48 : vector<8x8xf32>
    %50 = arith.truncf %49 : vector<8x8xf32> to vector<8x8xbf16>
    %cst_17 = arith.constant dense<0.000000e+00> : vector<8x8xf32>
    %51 = tpu.matmul %50, %37, %cst_17 {dimension_numbers = #tpu.dot_dimension_numbers<[1], [0], [0], [1], [0, 0, 1, 1], [], []>} : vector<8x8xbf16>, vector<8x8xbf16>, vector<8x8xf32> -> vector<8x8xf32>
    %52 = vector.extract_strided_slice %11 {offsets = [0, 16], sizes = [8, 8], strides = [1, 1]} : vector<8x96xf32> to vector<8x8xf32>
    %53 = arith.truncf %52 : vector<8x8xf32> to vector<8x8xbf16>
    %54 = vector.extract_strided_slice %11 {offsets = [0, 48], sizes = [8, 8], strides = [1, 1]} : vector<8x96xf32> to vector<8x8xf32>
    %55 = arith.truncf %54 : vector<8x8xf32> to vector<8x8xbf16>
    %56 = vector.extract_strided_slice %11 {offsets = [0, 80], sizes = [8, 8], strides = [1, 1]} : vector<8x96xf32> to vector<8x8xf32>
    %57 = arith.truncf %56 : vector<8x8xf32> to vector<8x8xbf16>
    %cst_18 = arith.constant dense<0.000000e+00> : vector<8x8xf32>
    %58 = tpu.matmul %53, %55, %cst_18 {dimension_numbers = #tpu.dot_dimension_numbers<[1], [1], [0], [0], [0, 0, 1, 0], [], []>} : vector<8x8xbf16>, vector<8x8xbf16>, vector<8x8xf32> -> vector<8x8xf32>
    %cst_19 = arith.constant 0.353553385 : f32
    %59 = vector.broadcast %cst_19 : f32 to vector<8x8xf32>
    %60 = arith.mulf %58, %59 : vector<8x8xf32>
    %cst_20 = arith.constant dense<0xFF800000> : vector<8xf32>
    %61 = vector.multi_reduction <maximumf>, %60, %cst_20 [1] : vector<8x8xf32> to vector<8xf32>
    %62 = vector.shape_cast %61 : vector<8xf32> to vector<8x1xf32>
    %63 = vector.broadcast %62 : vector<8x1xf32> to vector<8x8xf32>
    %64 = arith.subf %60, %63 : vector<8x8xf32>
    %65 = math.exp %64 : vector<8x8xf32>
    %cst_21 = arith.constant dense<0.000000e+00> : vector<8xf32>
    %66 = vector.multi_reduction <add>, %65, %cst_21 [1] : vector<8x8xf32> to vector<8xf32>
    %67 = vector.shape_cast %66 : vector<8xf32> to vector<8x1xf32>
    %68 = vector.broadcast %67 : vector<8x1xf32> to vector<8x8xf32>
    %69 = arith.divf %65, %68 : vector<8x8xf32>
    %70 = arith.truncf %69 : vector<8x8xf32> to vector<8x8xbf16>
    %cst_22 = arith.constant dense<0.000000e+00> : vector<8x8xf32>
    %71 = tpu.matmul %70, %57, %cst_22 {dimension_numbers = #tpu.dot_dimension_numbers<[1], [0], [0], [1], [0, 0, 1, 1], [], []>} : vector<8x8xbf16>, vector<8x8xbf16>, vector<8x8xf32> -> vector<8x8xf32>
    %72 = vector.extract_strided_slice %11 {offsets = [0, 24], sizes = [8, 8], strides = [1, 1]} : vector<8x96xf32> to vector<8x8xf32>
    %73 = arith.truncf %72 : vector<8x8xf32> to vector<8x8xbf16>
    %74 = vector.extract_strided_slice %11 {offsets = [0, 56], sizes = [8, 8], strides = [1, 1]} : vector<8x96xf32> to vector<8x8xf32>
    %75 = arith.truncf %74 : vector<8x8xf32> to vector<8x8xbf16>
    %76 = vector.extract_strided_slice %11 {offsets = [0, 88], sizes = [8, 8], strides = [1, 1]} : vector<8x96xf32> to vector<8x8xf32>
    %77 = arith.truncf %76 : vector<8x8xf32> to vector<8x8xbf16>
    %cst_23 = arith.constant dense<0.000000e+00> : vector<8x8xf32>
    %78 = tpu.matmul %73, %75, %cst_23 {dimension_numbers = #tpu.dot_dimension_numbers<[1], [1], [0], [0], [0, 0, 1, 0], [], []>} : vector<8x8xbf16>, vector<8x8xbf16>, vector<8x8xf32> -> vector<8x8xf32>
    %cst_24 = arith.constant 0.353553385 : f32
    %79 = vector.broadcast %cst_24 : f32 to vector<8x8xf32>
    %80 = arith.mulf %78, %79 : vector<8x8xf32>
    %cst_25 = arith.constant dense<0xFF800000> : vector<8xf32>
    %81 = vector.multi_reduction <maximumf>, %80, %cst_25 [1] : vector<8x8xf32> to vector<8xf32>
    %82 = vector.shape_cast %81 : vector<8xf32> to vector<8x1xf32>
    %83 = vector.broadcast %82 : vector<8x1xf32> to vector<8x8xf32>
    %84 = arith.subf %80, %83 : vector<8x8xf32>
    %85 = math.exp %84 : vector<8x8xf32>
    %cst_26 = arith.constant dense<0.000000e+00> : vector<8xf32>
    %86 = vector.multi_reduction <add>, %85, %cst_26 [1] : vector<8x8xf32> to vector<8xf32>
    %87 = vector.shape_cast %86 : vector<8xf32> to vector<8x1xf32>
    %88 = vector.broadcast %87 : vector<8x1xf32> to vector<8x8xf32>
    %89 = arith.divf %85, %88 : vector<8x8xf32>
    %90 = arith.truncf %89 : vector<8x8xf32> to vector<8x8xbf16>
    %cst_27 = arith.constant dense<0.000000e+00> : vector<8x8xf32>
    %91 = tpu.matmul %90, %77, %cst_27 {dimension_numbers = #tpu.dot_dimension_numbers<[1], [0], [0], [1], [0, 0, 1, 1], [], []>} : vector<8x8xbf16>, vector<8x8xbf16>, vector<8x8xf32> -> vector<8x8xf32>
    %92 = tpu.concatenate %31, %51, %71, %91 in 1 : vector<8x8xf32>, vector<8x8xf32>, vector<8x8xf32>, vector<8x8xf32> -> vector<8x32xf32>
    %93 = arith.truncf %92 : vector<8x32xf32> to vector<8x32xbf16>
    %c0_28 = arith.constant 0 : index
    %c0_29 = arith.constant 0 : index
    %c0_30 = arith.constant 0 : index
    %94 = vector.load %arg5[%c0_28, %c0_29, %c0_30] : memref<1x32x32xbf16, #tpu.memory_space<vmem>>, vector<1x32x32xbf16>
    %95 = vector.shape_cast %94 : vector<1x32x32xbf16> to vector<32x32xbf16>
    %cst_31 = arith.constant dense<0.000000e+00> : vector<8x32xf32>
    %96 = tpu.matmul %93, %95, %cst_31 {dimension_numbers = #tpu.dot_dimension_numbers<[1], [0], [0], [1], [0, 0, 1, 1], [], []>} : vector<8x32xbf16>, vector<32x32xbf16>, vector<8x32xf32> -> vector<8x32xf32>
    %c0_32 = arith.constant 0 : index
    %c0_33 = arith.constant 0 : index
    %c0_34 = arith.constant 0 : index
    %97 = vector.load %arg6[%c0_32, %c0_33, %c0_34] : memref<1x1x32xf32, #tpu.memory_space<vmem>>, vector<1x1x32xf32>
    %98 = vector.shape_cast %97 : vector<1x1x32xf32> to vector<1x32xf32>
    %99 = vector.broadcast %98 : vector<1x32xf32> to vector<8x32xf32>
    %100 = arith.addf %96, %99 : vector<8x32xf32>
    %101 = arith.addf %3, %100 : vector<8x32xf32>
    %c0_35 = arith.constant 0 : index
    %c0_36 = arith.constant 0 : index
    %c0_37 = arith.constant 0 : index
    %102 = vector.load %arg11[%c0_35, %c0_36, %c0_37] : memref<1x1x32xf32, #tpu.memory_space<vmem>>, vector<1x1x32xf32>
    %103 = vector.shape_cast %102 : vector<1x1x32xf32> to vector<1x32xf32>
    %c0_38 = arith.constant 0 : index
    %c0_39 = arith.constant 0 : index
    %c0_40 = arith.constant 0 : index
    %104 = vector.load %arg12[%c0_38, %c0_39, %c0_40] : memref<1x1x32xf32, #tpu.memory_space<vmem>>, vector<1x1x32xf32>
    %105 = vector.shape_cast %104 : vector<1x1x32xf32> to vector<1x32xf32>
    %cst_41 = arith.constant dense<0.000000e+00> : vector<8xf32>
    %106 = vector.multi_reduction <add>, %101, %cst_41 [1] : vector<8x32xf32> to vector<8xf32>
    %107 = vector.shape_cast %106 : vector<8xf32> to vector<8x1xf32>
    %cst_42 = arith.constant 3.200000e+01 : f32
    %108 = vector.broadcast %cst_42 : f32 to vector<8x1xf32>
    %109 = arith.divf %107, %108 : vector<8x1xf32>
    %110 = vector.broadcast %109 : vector<8x1xf32> to vector<8x32xf32>
    %111 = arith.subf %101, %110 : vector<8x32xf32>
    %112 = arith.mulf %111, %111 : vector<8x32xf32>
    %cst_43 = arith.constant dense<0.000000e+00> : vector<8xf32>
    %113 = vector.multi_reduction <add>, %112, %cst_43 [1] : vector<8x32xf32> to vector<8xf32>
    %114 = vector.shape_cast %113 : vector<8xf32> to vector<8x1xf32>
    %cst_44 = arith.constant 3.200000e+01 : f32
    %115 = vector.broadcast %cst_44 : f32 to vector<8x1xf32>
    %116 = arith.divf %114, %115 : vector<8x1xf32>
    %117 = vector.broadcast %109 : vector<8x1xf32> to vector<8x32xf32>
    %118 = arith.subf %101, %117 : vector<8x32xf32>
    %cst_45 = arith.constant 9.99999974E-6 : f32
    %119 = vector.broadcast %cst_45 : f32 to vector<8x1xf32>
    %120 = arith.addf %116, %119 : vector<8x1xf32>
    %121 = math.rsqrt %120 : vector<8x1xf32>
    %122 = vector.broadcast %121 : vector<8x1xf32> to vector<8x32xf32>
    %123 = arith.mulf %118, %122 : vector<8x32xf32>
    %124 = vector.broadcast %103 : vector<1x32xf32> to vector<8x32xf32>
    %125 = arith.mulf %123, %124 : vector<8x32xf32>
    %126 = vector.broadcast %105 : vector<1x32xf32> to vector<8x32xf32>
    %127 = arith.addf %125, %126 : vector<8x32xf32>
    %128 = arith.truncf %127 : vector<8x32xf32> to vector<8x32xbf16>
    %c0_46 = arith.constant 0 : index
    %c0_47 = arith.constant 0 : index
    %c0_48 = arith.constant 0 : index
    %129 = vector.load %arg7[%c0_46, %c0_47, %c0_48] : memref<1x32x2048xbf16, #tpu.memory_space<vmem>>, vector<1x32x2048xbf16>
    %130 = vector.shape_cast %129 : vector<1x32x2048xbf16> to vector<32x2048xbf16>
    %cst_49 = arith.constant dense<0.000000e+00> : vector<8x2048xf32>
    %131 = tpu.matmul %128, %130, %cst_49 {dimension_numbers = #tpu.dot_dimension_numbers<[1], [0], [0], [1], [0, 0, 1, 1], [], []>} : vector<8x32xbf16>, vector<32x2048xbf16>, vector<8x2048xf32> -> vector<8x2048xf32>
    %c0_50 = arith.constant 0 : index
    %c0_51 = arith.constant 0 : index
    %c0_52 = arith.constant 0 : index
    %132 = vector.load %arg8[%c0_50, %c0_51, %c0_52] : memref<1x1x2048xf32, #tpu.memory_space<vmem>>, vector<1x1x2048xf32>
    %133 = vector.shape_cast %132 : vector<1x1x2048xf32> to vector<1x2048xf32>
    %134 = vector.broadcast %133 : vector<1x2048xf32> to vector<8x2048xf32>
    %135 = arith.addf %131, %134 : vector<8x2048xf32>
    %cst_53 = arith.constant 0.000000e+00 : f32
    %136 = vector.broadcast %cst_53 : f32 to vector<8x2048xf32>
    %137 = arith.maximumf %135, %136 : vector<8x2048xf32>
    %138 = arith.truncf %137 : vector<8x2048xf32> to vector<8x2048xbf16>
    %c0_54 = arith.constant 0 : index
    %c0_55 = arith.constant 0 : index
    %c0_56 = arith.constant 0 : index
    %139 = vector.load %arg9[%c0_54, %c0_55, %c0_56] : memref<1x2048x32xbf16, #tpu.memory_space<vmem>>, vector<1x2048x32xbf16>
    %140 = vector.shape_cast %139 : vector<1x2048x32xbf16> to vector<2048x32xbf16>
    %cst_57 = arith.constant dense<0.000000e+00> : vector<8x32xf32>
    %141 = tpu.matmul %138, %140, %cst_57 {dimension_numbers = #tpu.dot_dimension_numbers<[1], [0], [0], [1], [0, 0, 1, 1], [], []>} : vector<8x2048xbf16>, vector<2048x32xbf16>, vector<8x32xf32> -> vector<8x32xf32>
    %c0_58 = arith.constant 0 : index
    %c0_59 = arith.constant 0 : index
    %c0_60 = arith.constant 0 : index
    %142 = vector.load %arg10[%c0_58, %c0_59, %c0_60] : memref<1x1x32xf32, #tpu.memory_space<vmem>>, vector<1x1x32xf32>
    %143 = vector.shape_cast %142 : vector<1x1x32xf32> to vector<1x32xf32>
    %144 = vector.broadcast %143 : vector<1x32xf32> to vector<8x32xf32>
    %145 = arith.addf %141, %144 : vector<8x32xf32>
    %146 = arith.addf %127, %145 : vector<8x32xf32>
    %c0_61 = arith.constant 0 : index
    %c0_62 = arith.constant 0 : index
    %c0_63 = arith.constant 0 : index
    %147 = vector.load %arg13[%c0_61, %c0_62, %c0_63] : memref<1x1x32xf32, #tpu.memory_space<vmem>>, vector<1x1x32xf32>
    %148 = vector.shape_cast %147 : vector<1x1x32xf32> to vector<1x32xf32>
    %c0_64 = arith.constant 0 : index
    %c0_65 = arith.constant 0 : index
    %c0_66 = arith.constant 0 : index
    %149 = vector.load %arg14[%c0_64, %c0_65, %c0_66] : memref<1x1x32xf32, #tpu.memory_space<vmem>>, vector<1x1x32xf32>
    %150 = vector.shape_cast %149 : vector<1x1x32xf32> to vector<1x32xf32>
    %cst_67 = arith.constant dense<0.000000e+00> : vector<8xf32>
    %151 = vector.multi_reduction <add>, %146, %cst_67 [1] : vector<8x32xf32> to vector<8xf32>
    %152 = vector.shape_cast %151 : vector<8xf32> to vector<8x1xf32>
    %cst_68 = arith.constant 3.200000e+01 : f32
    %153 = vector.broadcast %cst_68 : f32 to vector<8x1xf32>
    %154 = arith.divf %152, %153 : vector<8x1xf32>
    %155 = vector.broadcast %154 : vector<8x1xf32> to vector<8x32xf32>
    %156 = arith.subf %146, %155 : vector<8x32xf32>
    %157 = arith.mulf %156, %156 : vector<8x32xf32>
    %cst_69 = arith.constant dense<0.000000e+00> : vector<8xf32>
    %158 = vector.multi_reduction <add>, %157, %cst_69 [1] : vector<8x32xf32> to vector<8xf32>
    %159 = vector.shape_cast %158 : vector<8xf32> to vector<8x1xf32>
    %cst_70 = arith.constant 3.200000e+01 : f32
    %160 = vector.broadcast %cst_70 : f32 to vector<8x1xf32>
    %161 = arith.divf %159, %160 : vector<8x1xf32>
    %162 = vector.broadcast %154 : vector<8x1xf32> to vector<8x32xf32>
    %163 = arith.subf %146, %162 : vector<8x32xf32>
    %cst_71 = arith.constant 9.99999974E-6 : f32
    %164 = vector.broadcast %cst_71 : f32 to vector<8x1xf32>
    %165 = arith.addf %161, %164 : vector<8x1xf32>
    %166 = math.rsqrt %165 : vector<8x1xf32>
    %167 = vector.broadcast %166 : vector<8x1xf32> to vector<8x32xf32>
    %168 = arith.mulf %163, %167 : vector<8x32xf32>
    %169 = vector.broadcast %148 : vector<1x32xf32> to vector<8x32xf32>
    %170 = arith.mulf %168, %169 : vector<8x32xf32>
    %171 = vector.broadcast %150 : vector<1x32xf32> to vector<8x32xf32>
    %172 = arith.addf %170, %171 : vector<8x32xf32>
    %c0_72 = arith.constant 0 : index
    %c0_73 = arith.constant 0 : index
    %173 = vector.load %arg16[%c0_72, %c0_73] : memref<8x32xf32, #tpu.memory_space<vmem>>, vector<8x32xf32>
    tpu.vector_store %arg16[%c0_72, %c0_73], %172 {strides = array<i32>} : memref<8x32xf32, #tpu.memory_space<vmem>>, vector<8x32xf32>,
    %c1_i32 = arith.constant 1 : i32
    %174 = arith.cmpi eq, %arg1, %c1_i32 : i32
    %175 = arith.extui %174 : i1 to i32
    %c0_i32_74 = arith.constant 0 : i32
    %176 = arith.cmpi ne, %175, %c0_i32_74 : i32
    scf.if %176 {
      %c0_75 = arith.constant 0 : index
      %c0_76 = arith.constant 0 : index
      %c0_77 = arith.constant 0 : index
      %177 = vector.load %arg15[%c0_75, %c0_76, %c0_77] : memref<1x8x32xf32, #tpu.memory_space<vmem>>, vector<1x8x32xf32>
      %178 = vector.shape_cast %177 : vector<1x8x32xf32> to vector<8x32xf32>
      %179 = vector.shape_cast %172 : vector<8x32xf32> to vector<1x8x32xf32>
      tpu.vector_store %arg15[%c0_75, %c0_76, %c0_77], %179 {strides = array<i32>} : memref<1x8x32xf32, #tpu.memory_space<vmem>>, vector<1x8x32xf32>,
    } else {
    }
    return
  }
  func.func @transform_0(%arg0: i32, %arg1: i32) -> (i32, i32, i32) {
    %c0_i32 = arith.constant 0 : i32
    %c0_i32_0 = arith.constant 0 : i32
    %c0_i32_1 = arith.constant 0 : i32
    return %arg0, %c0_i32, %c0_i32_0 : i32, i32, i32
  }
  func.func @transform_1(%arg0: i32, %arg1: i32) -> (i32, i32, i32) {
    %c0_i32 = arith.constant 0 : i32
    %c0_i32_0 = arith.constant 0 : i32
    %c0_i32_1 = arith.constant 0 : i32
    return %arg1, %c0_i32, %c0_i32_0 : i32, i32, i32
  }
  func.func @transform_2(%arg0: i32, %arg1: i32) -> (i32, i32, i32) {
    %c0_i32 = arith.constant 0 : i32
    %c0_i32_0 = arith.constant 0 : i32
    %c0_i32_1 = arith.constant 0 : i32
    return %arg1, %c0_i32, %c0_i32_0 : i32, i32, i32
  }
  func.func @transform_3(%arg0: i32, %arg1: i32) -> (i32, i32, i32) {
    %c0_i32 = arith.constant 0 : i32
    %c0_i32_0 = arith.constant 0 : i32
    %c0_i32_1 = arith.constant 0 : i32
    return %arg1, %c0_i32, %c0_i32_0 : i32, i32, i32
  }
  func.func @transform_4(%arg0: i32, %arg1: i32) -> (i32, i32, i32) {
    %c0_i32 = arith.constant 0 : i32
    %c0_i32_0 = arith.constant 0 : i32
    %c0_i32_1 = arith.constant 0 : i32
    return %arg1, %c0_i32, %c0_i32_0 : i32, i32, i32
  }
  func.func @transform_5(%arg0: i32, %arg1: i32) -> (i32, i32, i32) {
    %c0_i32 = arith.constant 0 : i32
    %c0_i32_0 = arith.constant 0 : i32
    %c0_i32_1 = arith.constant 0 : i32
    return %arg1, %c0_i32, %c0_i32_0 : i32, i32, i32
  }
  func.func @transform_6(%arg0: i32, %arg1: i32) -> (i32, i32, i32) {
    %c0_i32 = arith.constant 0 : i32
    %c0_i32_0 = arith.constant 0 : i32
    %c0_i32_1 = arith.constant 0 : i32
    return %arg1, %c0_i32, %c0_i32_0 : i32, i32, i32
  }
  func.func @transform_7(%arg0: i32, %arg1: i32) -> (i32, i32, i32) {
    %c0_i32 = arith.constant 0 : i32
    %c0_i32_0 = arith.constant 0 : i32
    %c0_i32_1 = arith.constant 0 : i32
    return %arg1, %c0_i32, %c0_i32_0 : i32, i32, i32
  }
  func.func @transform_8(%arg0: i32, %arg1: i32) -> (i32, i32, i32) {
    %c0_i32 = arith.constant 0 : i32
    %c0_i32_0 = arith.constant 0 : i32
    %c0_i32_1 = arith.constant 0 : i32
    return %arg1, %c0_i32, %c0_i32_0 : i32, i32, i32
  }
  func.func @transform_9(%arg0: i32, %arg1: i32) -> (i32, i32, i32) {
    %c0_i32 = arith.constant 0 : i32
    %c0_i32_0 = arith.constant 0 : i32
    %c0_i32_1 = arith.constant 0 : i32
    return %arg1, %c0_i32, %c0_i32_0 : i32, i32, i32
  }
  func.func @transform_10(%arg0: i32, %arg1: i32) -> (i32, i32, i32) {
    %c0_i32 = arith.constant 0 : i32
    %c0_i32_0 = arith.constant 0 : i32
    %c0_i32_1 = arith.constant 0 : i32
    return %arg1, %c0_i32, %c0_i32_0 : i32, i32, i32
  }
  func.func @transform_11(%arg0: i32, %arg1: i32) -> (i32, i32, i32) {
    %c0_i32 = arith.constant 0 : i32
    %c0_i32_0 = arith.constant 0 : i32
    %c0_i32_1 = arith.constant 0 : i32
    return %arg1, %c0_i32, %c0_i32_0 : i32, i32, i32
  }
  func.func @transform_12(%arg0: i32, %arg1: i32) -> (i32, i32, i32) {
    %c0_i32 = arith.constant 0 : i32
    %c0_i32_0 = arith.constant 0 : i32
    %c0_i32_1 = arith.constant 0 : i32
    return %arg1, %c0_i32, %c0_i32_0 : i32, i32, i32
  }
  func.func @transform_13(%arg0: i32, %arg1: i32) -> (i32, i32, i32) {
    %c0_i32 = arith.constant 0 : i32
    %c0_i32_0 = arith.constant 0 : i32
    %c0_i32_1 = arith.constant 0 : i32
    return %arg0, %c0_i32, %c0_i32_0 : i32, i32, i32
  }
}

</mosaic_0001>

<bundles_post_ra>
// kernel: tpu_custom_call.1
= control target key start
LH: loop header
LB: loop body
LE: loop exit
PB: predicated region body
PF: predicated region fallthrough
CT: control target
= control target key end

     0   :  { %s5003_s0 = inlined_call_operand.vmem [shape: f32[2,8,32], index: 0, kind: input, shape index: {}]   ;;  %s5004_s1 = inlined_call_operand.vmem [shape: bf16[2,32,96], index: 1, kind: input, shape index: {}]   ;;  %s5005_s2 = inlined_call_operand.vmem [shape: f32[2,1,96], index: 2, kind: input, shape index: {}]   ;;  %s5006_s3 = inlined_call_operand.vmem [shape: bf16[2,32,32], index: 3, kind: input, shape index: {}]   ;;  %s5007_s4 = inlined_call_operand.vmem [shape: f32[2,1,32], index: 4, kind: input, shape index: {}]   ;;  %s5008_s5 = inlined_call_operand.vmem [shape: bf16[2,32,2048], index: 5, kind: input, shape index: {}]   ;;  %s5009_s6 = inlined_call_operand.vmem [shape: f32[2,1,2048], index: 6, kind: input, shape index: {}]   ;;  %s5010_s7 = inlined_call_operand.vmem [shape: bf16[2,2048,32], index: 7, kind: input, shape index: {}]   ;;  %s5011_s8 = inlined_call_operand.vmem [shape: f32[2,1,32], index: 8, kind: input, shape index: {}]   ;;  %s5012_s9 = inlined_call_operand.vmem [shape: f32[2,1,32], index: 9, kind: input, shape index: {}]   ;;  %s5013_s10 = inlined_call_operand.vmem [shape: f32[2,1,32], index: 10, kind: input, shape index: {}]   ;;  %s5014_s11 = inlined_call_operand.vmem [shape: f32[2,1,32], index: 11, kind: input, shape index: {}]   ;;  %s5015_s12 = inlined_call_operand.vmem [shape: f32[2,1,32], index: 12, kind: input, shape index: {}]   ;;  %s5016_s13 = inlined_call_operand.hbm [shape: f32[2,8,32], index: 13, kind: output, shape index: {}]  }
   0x1   :  { %5033 = sst [smem:[#allocation20_spill]] %s5003_s0 }
   0x2   :  { %5034 = sst [smem:[#allocation21_spill]] %s5004_s1 }
   0x3   :  { %5035 = sst [smem:[#allocation22_spill]] %s5006_s3 }
   0x4   :  { %5036 = sst [smem:[#allocation23_spill]] %s5008_s5 }
   0x5   :  { %5037 = sst [smem:[#allocation24_spill]] %s5009_s6 }
   0x6   :  { %5038 = sst [smem:[#allocation25_spill]] %s5010_s7 }
   0x7   :  { %5039 = sst [smem:[#allocation26_spill]] %s5015_s12 }
   0x8   :  { %5040 = sst [smem:[#allocation27_spill]] %s5016_s13 }
   0x9   :  { %18 = vsyncpa [#allocation4], 0 }
   0xa   :  { %20 = vsyncpa [#allocation4 + $0x1], 0  ;;  %s4414_s25 = smov 0   ;;  %s4416_s26 = smov 0  }
   0xb   :  { %s4418_s27 = smov 0   ;;  %s4420_s28 = smov 0  }
   0xc   :  { %s4422_s29 = smov 0   ;;  %s4424_s30 = smov 0  }
   0xd   :  { %s4426_s14 = smov 0   ;;  %s4428_s15 = smov 0  }
   0xe LB: > { %5041 = sst [smem:[#allocation6_spill]] %s4296_s25  ;;  %s3515_s16 = sadd.s32 4294967295, %s4324_s15   ;;  %s4324_s15 = sphi %s4428_s15, %s26_s15   ;;  %s4320_s14 = sphi %s4426_s14, %s5085_s14   ;;  %s4316_s30 = sphi %s4424_s30, %s5084_s30   ;;  %s4312_s29 = sphi %s4422_s29, %s5083_s29   ;;  %s4308_s28 = sphi %s4420_s28, %s5082_s28   ;;  %s4304_s27 = sphi %s4418_s27, %s5081_s27   ;;  %s4300_s26 = sphi %s4416_s26, %s5080_s26   ;;  %s4296_s25 = sphi %s4414_s25, %s5079_s25  }
   0xf   : > { %5042 = sst [smem:[#allocation7_spill]] %s4300_s26  ;;  %s3516_s17 = sadd.s32 4294967294, %s4324_s15  }
  0x10   : > { %5043 = sst [smem:[#allocation8_spill]] %s4304_s27  ;;  %s35_s18 = sadd.s32 1, %s4316_s30 }
  0x11   : > { %5044 = sst [smem:[#allocation9_spill]] %s4308_s28  ;;  %p36_p0 = scmp.ge.s32.totalorder %s35_s18, 2 }
  0x12   : > { %5045 = sst [smem:[#allocation10_spill]] %s4312_s29  ;;  %s38_s19 = sadd.s32 1, %s4320_s14 }
  0x13   : > { %5046 = sst [smem:[#allocation11_spill]] %s4316_s30  ;;  %p393_p1 = scmp.ne.s32.totalorder %s4304_s27, %s4300_s26 }
  0x14   : > { %5047 = sst [smem:[#allocation12_spill]] %s4320_s14  ;;  %p394_p2 = scmp.eq.s32.totalorder %s3515_s16, 3 }
  0x15   : > { %5048 = sst [smem:[#allocation13_spill]] %s4324_s15  ;;  %s5087_s18 = smov (%p36_p0, %s35_s18), 0 }
  0x16   : > { %5049 = sst [smem:[#allocation14_spill]] %s5087_s18  ;;  %s5089_s19 = smov (!%p36_p0, %s38_s19), %s4320_s14 }
  0x17   : > { %p4463_p3 = por %p394_p2, %p393_p1  ;;  %p399_p4 = scmp.ne.s32.totalorder %s4300_s26, %s4296_s25 }
  0x18   : > { %p40_p5 = scmp.ge.s32.totalorder %s5089_s19, 2  ;;  %p400_p6 = scmp.eq.s32.totalorder %s3516_s17, 3 }
  0x19   : > { %s5050_s20 = scalar_select %p4463_p3, 1, 0 }
  0x1a   : > { %p3519_p7 = scmp.ge.s32.totalorder %s4324_s15, 1  ;;  %p506_p8 = scmp.lt.s32.totalorder %s4324_s15, 5 }
  0x1b   : > { %5051 = sst [smem:[#allocation15_spill]] %s5050_s20  ;;  %s5091_s19 = smov (%p40_p5, %s5089_s19), 0 }
  0x1c   : > { %5052 = sst [smem:[#allocation16_spill]] %s5091_s19  ;;  %p4473_p9 = por %p400_p6, %p399_p4 }
  0x1d   : > { %p507_p10 = pnand %p3519_p7, %p506_p8  ;;  %s380_s22 = ssub.s32 %s4320_s14, %s5091_s19 }
  0x1e   : > { %s5053_s21 = scalar_select %p4473_p9, 1, 0 }
  0x1f   : > { %s383_s23 = sadd.s32 1, %s4304_s27  ;;  %p381_p11 = scmp.eq.s32.totalorder %s380_s22, 0 }
  0x20   : > { %5054 = sst [smem:[#allocation17_spill]] %s5053_s21  ;;  %510 = sbr.rel (%p507_p10) target bundleno = 2622 (0xa3e), region = 72 }
  0x21   : > { %s4481_s24 = scalar_select %p381_p11, %s4304_s27, %s383_s23  }
  0x23   : > { %5055 = sst [smem:[#allocation18_spill]] %s4481_s24 }
  0x25   : > { %s5019_s16 = sand.u32 1, %s4300_s26   ;;  %p594_p12 = scmp.lt.s32.totalorder %s4312_s29, 1 }
  0x26   : > { %s4487_s17 = sshll.u32 %s5019_s16, 3  ;;  %p598_p13 = scmp.lt.s32.totalorder %s4308_s28, 1 }
  0x27   : > { %s595_s18 = scalar_select %p594_p12, %s4312_s29, 1 }
  0x28   : > { %s4492_s30 = scalar_select %p598_p13, %s4308_s28, 1 }
  0x29   : > { %s3521_s22 = sshll.u32 %s595_s18, 3  ;;  %s5056_s0 = sld [smem:[#allocation20_spill]] }
  0x2a   : > { %s3726_s14 = sshll.u32 %s4492_s30, 4  ;;  %s5057_s1 = sld [smem:[#allocation21_spill]] }
  0x2b   : > { %s5058_s3 = sld [smem:[#allocation22_spill]]  ;;  %s3729_s15 = sshll.u32 %s4492_s30, 10 }
  0x2c   : > { %s5059_s6 = sld [smem:[#allocation24_spill]]  ;;  %s630_s18 = scalar_lea.vmem %s5011_s8, %s4492_s30 }
  0x2d   : > { %s5061_s5 = sld [smem:[#allocation23_spill]]  ;;  %s636_s27 = scalar_lea.vmem %s5013_s10, %s4492_s30 }
  0x2e   : > { %s5062_s7 = sld [smem:[#allocation25_spill]] }
  0x2f   : > { %s597_s16 = scalar_lea.vmem %s5056_s0, %s3521_s22  ;;  %s3728_s22 = sshll.u32 %s4492_s30, 8 }
  0x30   : > { %s602_s21 = scalar_lea.vmem %s5057_s1, %s3726_s14  ;;  %s633_s0 = scalar_lea.vmem %s5012_s9, %s4492_s30 }
  0x31   : > { %s4508_s29 = scalar_lea.vmem %s5058_s3, %s3726_s14 }
  0x32   : > { %s4518_s12 = scalar_lea.vmem %s5059_s6, %s3726_s14 }
  0x33   : > { %5060 = sst [smem:[#allocation19_spill]] %s4518_s12  ;;  %s4523_s25 = scalar_lea.vmem %s5061_s5, %s3728_s22 }
  0x34   : > { %s4529_s20 = scalar_lea.vmem %s5062_s7, %s3729_s15  ;;  %s639_s5 = scalar_lea.vmem %s5014_s11, %s4492_s30 }
  0x35   : > { %s5063_s15 = sld [smem:[#allocation26_spill]]  ;;  %s593_s7 = scalar_lea.vmem [#allocation3], %s4487_s17 }
  0x36   : > { %s5064_s12 = sld [smem:[#allocation9_spill]] }
  0x3b   : > { %s642_s26 = scalar_lea.vmem %s5063_s15, %s4492_s30 }
  0x3c   : > { %p3531_p0 = scmp.ne.s32.totalorder %s5064_s12, 0 }
  0x3e   : > { %647 = sbr.rel (%p3531_p0) target bundleno = 69 (0x45), region = 76 }
  0x43   : > { %v648_v0 = vld [vmem:[%s597_s16] sm:$0xff]  ;;  %vm649_vm0 = vcmask 261120  }
  0x44   : > { %650 = vst.msk [vmem:[#allocation2] sm:$0xff] %vm649_vm0, %v648_v0 }
  0x45 PF: > { %v4080_v1 = vld [vmem:[%s602_s21 + $0x8] sm:$0xff]   ;;  %v4326_v2 = vmov 0.0   ;;  %v4081_v3 = vld [vmem:[%s602_s21] sm:$0xff]   ;;  %vm4327_vm1 = vmmov 0   ;;  %vm676_vm2 = vcmask 261120   ;;  %s5065_s6 = scalar_lea.vmem %s5005_s2, %s4492_s30  ;;  %s4328_s12 = smov 120  }
  0x46   : > { %3928 = vmatprep.subr.bf16.mxu0 %v4326_v2  ;;  %3936 = vmatprep.subr.bf16.mxu1 %v4326_v2  ;;  %v3532_v6 = vld [vmem:[%s5065_s6] ss:$0 sm:$0xff]  ;;  %s4329_s21 = smov 96   ;;  %s4330_s16 = smov 80   ;;  %vm724_vm3 = vcmask 64512   ;;  %vm789_vm4 = vcmask 1043456  }
  0x47   : > { %3929 = vmatpush3.bf16.msra.mxu0 %v4080_v1  ;;  %3932 = vmatprep.mubr.msk.bf16.mxu0 %vm4327_vm1, %v4326_v2  ;;  %s4331_s19 = smov 88   ;;  %s4332_s28 = smov 72   ;;  %vm1179_vm5 = vcmask 130048   ;;  %vm1181_vm6 = vcmask 195584  }
  0x48   : > { %3930 = vmatprep.subr.bf16.mxu0 %v4326_v2  ;;  %3938 = vmatprep.mubr.msk.bf16.mxu1 %vm4327_vm1, %v4326_v2  ;;  %s4333_s14 = smov 112   ;;  %s4334_s23 = smov 104  }
  0x49   : > { %s4335_s22 = smov 56   ;;  %s4336_s24 = smov 64  }
  0x4a   : > { %s4337_s13 = smov 40   ;;  %s4338_s15 = smov 48  }
  0x4b   : > { %v4557_v4 = vld [vmem:[#allocation2] sm:$0xff]  ;;  %3931 = vmatpush3.bf16.msra.mxu0 %v4081_v3  ;;  %s4339_s1 = smov 8   ;;  %s4340_s3 = smov 16  }
  0x4c   : > { %v652_v5 = vpack.c.bf16 %v4557_v4, %v4557_v4  ;;  %3942 = vmatprep.subr.bf16.mxu0 %v4326_v2  ;;  %s4341_s6 = smov 24  }
  0x4e   : > { %3933 = vmatmul.mubr.msk.bf16.vlgmr.msra.gmra.mxu0 %vm676_vm2, %v652_v5 }
  0x4f   : > { %3944 = vmatprep.mubr.msk.bf16.mxu0 %vm4327_vm1, %v4326_v2 }
 0x10e   : > { %v714_v7 = vpop.f32.mrf.mxu0 }
 0x10f   : > { %v715_v8 = vadd.f32 %v3532_v6, %v714_v7 }
 0x110   : > { %v3934_v9 = vpop.f32.mrf.mxu0 }
 0x111   : > { %v4573_v10 = vpack.c.bf16 %v715_v8, %v715_v8 }
 0x112   : > { %v717_v11 = vpop.f32.mrf.mxu0 }
 0x113   : > { %833 = vrot.lane.b32.xlu1 %v4573_v10, %s4328_s12  ;;  %722 = vrot.lane.b32.xlu0 %v4573_v10, %s4329_s21  ;;  %s5066_s21 = scalar_lea.vmem %s5007_s4, %s4492_s30 }
 0x114   : > { %v3935_v12 = vpop.f32.mrf.mxu0 }
 0x117   : > { %946 = vrot.lane.b32.xlu1 %v4573_v10, %s4330_s16  ;;  %835 = vrot.lane.b32.xlu0 %v4573_v10, %s4331_s19 }
 0x11b   : > { %1057 = vrot.lane.b32.xlu1 %v4573_v10, %s4332_s28  ;;  %944 = vrot.lane.b32.xlu0 %v4573_v10, %s4333_s14 }
 0x11f   : > { %1055 = vrot.lane.b32.xlu0 %v4573_v10, %s4334_s23 }
 0x185   : > { %v723_v13 = vpop.permute.xlu0 %722  ;;  %v834_v16 = vpop.permute.xlu1 %833 }
 0x186   : > { %v729_v14 = vsel %vm724_vm3, %v723_v13, 0 }
 0x187   : > { %3937 = vmatpush3.bf16.xpose.msra.mxu1 %v729_v14 }
 0x188   : > { %3948 = vmatprep.subr.bf16.mxu1 %v4326_v2 }
 0x189   : > { %v836_v15 = vpop.permute.xlu0 %835  ;;  %v947_v18 = vpop.permute.xlu1 %946 }
 0x18a   : > { %v841_v17 = vsel %vm724_vm3, %v836_v15, 0  ;;  %v952_v19 = vsel %vm724_vm3, %v947_v18, 0 }
 0x18d   : > { %v1058_v20 = vpop.permute.xlu1 %1057  ;;  %v945_v21 = vpop.permute.xlu0 %944 }
 0x18e   : > { %3939 = vmatmul.mubr.msk.bf16.vlgmr.msra.gmra.mxu1 %vm724_vm3, %v4573_v10  ;;  %v1063_v22 = vsel %vm724_vm3, %v1058_v20, 0 }
 0x18f   : > { %3949 = vmatpush3.bf16.xpose.msra.mxu1 %v841_v17  ;;  %3950 = vmatprep.mubr.msk.bf16.mxu1 %vm4327_vm1, %v4326_v2 }
 0x190   : > { %3960 = vmatprep.subr.bf16.mxu1 %v4326_v2 }
 0x191   : > { %v1056_v23 = vpop.permute.xlu0 %1055 }
 0x196   : > { %3951 = vmatmul.mubr.msk.bf16.vlgmr.msra.gmra.mxu1 %vm724_vm3, %v834_v16 }
 0x197   : > { %3961 = vmatpush3.bf16.xpose.msra.mxu1 %v952_v19  ;;  %3962 = vmatprep.mubr.msk.bf16.mxu1 %vm4327_vm1, %v4326_v2 }
 0x198   : > { %3972 = vmatprep.subr.bf16.mxu1 %v4326_v2 }
 0x19e   : > { %3963 = vmatmul.mubr.msk.bf16.vlgmr.msra.gmra.mxu1 %vm724_vm3, %v945_v21 }
 0x19f   : > { %3973 = vmatpush3.bf16.xpose.msra.mxu1 %v1063_v22  ;;  %3974 = vmatprep.mubr.msk.bf16.mxu1 %vm4327_vm1, %v4326_v2 }
 0x1a0   : > { %3984 = vmatprep.subr.bf16.mxu1 %v4326_v2 }
 0x1a6   : > { %3975 = vmatmul.mubr.msk.bf16.vlgmr.msra.gmra.mxu1 %vm724_vm3, %v1056_v23 }
 0x1a7   : > { %3988 = vmatprep.mubr.msk.bf16.mxu1 %vm4327_vm1, %v4326_v2 }
 0x24e   : > { %v765_v24 = vpop.f32.mrf.mxu1 }
 0x24f   : > { %v771_v25 = vmul.f32 0.35355338, %v765_v24 }
 0x250   : > { %v3940_v26 = vpop.f32.mrf.mxu1 }
 0x251   : > { %v772_v27 = vsel %vm724_vm3, %v771_v25, -inf }
 0x252   : > { %773 = vmax.xlane.f32.xlu1 %v772_v27  ;;  %v768_v28 = vpop.f32.mrf.mxu1 }
 0x254   : > { %v3941_v29 = vpop.f32.mrf.mxu1 }
 0x256   : > { %v877_v30 = vpop.f32.mrf.mxu1 }
 0x257   : > { %v883_v31 = vmul.f32 0.35355338, %v877_v30 }
 0x258   : > { %v3952_v32 = vpop.f32.mrf.mxu1 }
 0x259   : > { %v884_v33 = vsel %vm724_vm3, %v883_v31, -inf }
 0x25a   : > { %885 = vmax.xlane.f32.xlu0 %v884_v33  ;;  %v880_v34 = vpop.f32.mrf.mxu1 }
 0x25c   : > { %v3953_v35 = vpop.f32.mrf.mxu1 }
 0x25e   : > { %v988_v36 = vpop.f32.mrf.mxu1 }
 0x25f   : > { %v994_v37 = vmul.f32 0.35355338, %v988_v36 }
 0x260   : > { %v3964_v38 = vpop.f32.mrf.mxu1 }
 0x261   : > { %v995_v39 = vsel %vm724_vm3, %v994_v37, -inf  ;;  %v4082_v38 = vld [vmem:[%s4508_s29 + $0x8] sm:$0xff]  }
 0x262   : > { %996 = vmax.xlane.f32.xlu0 %v995_v39  ;;  %v991_v40 = vpop.f32.mrf.mxu1  ;;  %3985 = vmatpush3.bf16.msra.mxu1 %v4082_v38  ;;  %v4083_v39 = vld [vmem:[%s4508_s29] sm:$0xff]   ;;  %v1292_v38 = vld [vmem:[%s4523_s25 + $0x50] sm:$0xff] }
 0x263   : > { %3986 = vmatprep.subr.bf16.mxu1 %v4326_v2 }
 0x264   : > { %v3965_v41 = vpop.f32.mrf.mxu1 }
 0x266   : > { %v1099_v42 = vpop.f32.mrf.mxu1  ;;  %3987 = vmatpush3.bf16.msra.mxu1 %v4083_v39  ;;  %v1285_v39 = vld [vmem:[%s4523_s25 + $0x18] sm:$0xff] }
 0x267   : > { %v1105_v43 = vmul.f32 0.35355338, %v1099_v42 }
 0x268   : > { %v3976_v44 = vpop.f32.mrf.mxu1 }
 0x269   : > { %v1106_v45 = vsel %vm724_vm3, %v1105_v43, -inf }
 0x26a   : > { %1107 = vmax.xlane.f32.xlu1 %v1106_v45  ;;  %v1102_v46 = vpop.f32.mrf.mxu1 }
 0x26c   : > { %v3977_v47 = vpop.f32.mrf.mxu1 }
 0x2db   : > { %v774_v48 = vpop.xlane.xlu1 %773 }
 0x2dc   : > { %v775_v49 = vsub.f32 %v771_v25, %v774_v48 }
 0x2de   : > { %v776_v50 = vmul.f32 1.442695, %v775_v49 }
 0x2e0   : > { %4212 = vpow2.f32 %v776_v50 }
 0x2e3   : > { %v886_v51 = vpop.xlane.xlu0 %885 }
 0x2e4   : > { %v887_v52 = vsub.f32 %v883_v31, %v886_v51 }
 0x2e6   : > { %v888_v53 = vmul.f32 1.442695, %v887_v52 }
 0x2e8   : > { %4214 = vpow2.f32 %v888_v53 }
 0x2eb   : > { %v997_v54 = vpop.xlane.xlu0 %996 }
 0x2ec   : > { %v998_v55 = vsub.f32 %v994_v37, %v997_v54  ;;  %v3544_v54 = vld [vmem:[%s5066_s21] ss:$0 sm:$0xff] }
 0x2ed   : > { %v4213_v56 = vpop.eup %4212 }
 0x2ee   : > { %v999_v57 = vmul.f32 1.442695, %v998_v55  ;;  %v778_v58 = vsel %vm724_vm3, %v4213_v56, 0.0 }
 0x2ef   : > { %779 = vadd.xlane.f32.xlu0 %v778_v58 }
 0x2f0   : > { %4216 = vpow2.f32 %v999_v57 }
 0x2f3   : > { %v1108_v63 = vpop.xlane.xlu1 %1107 }
 0x2f4   : > { %v1109_v0 = vsub.f32 %v1105_v43, %v1108_v63 }
 0x2f5   : > { %v4215_v59 = vpop.eup %4214 }
 0x2f6   : > { %v890_v60 = vsel %vm724_vm3, %v4215_v59, 0.0  ;;  %v1110_v1 = vmul.f32 1.442695, %v1109_v0 }
 0x2f7   : > { %891 = vadd.xlane.f32.xlu1 %v890_v60 }
 0x2f8   : > { %4218 = vpow2.f32 %v1110_v1 }
 0x2fd   : > { %v4217_v61 = vpop.eup %4216 }
 0x2fe   : > { %v1001_v62 = vsel %vm724_vm3, %v4217_v61, 0.0 }
 0x2ff   : > { %1002 = vadd.xlane.f32.xlu0 %v1001_v62 }
 0x305   : > { %v4219_v3 = vpop.eup %4218 }
 0x306   : > { %v1112_v5 = vsel %vm724_vm3, %v4219_v3, 0.0 }
 0x308   : > { %896 = vrot.lane.b32.xlu1 %v4573_v10, %s4335_s22 }
 0x315   : > { %784 = vrot.lane.b32.xlu0 %v4573_v10, %s4336_s24 }
 0x319   : > { %1118 = vrot.lane.b32.xlu0 %v4573_v10, %s4337_s13  ;;  %s5069_s13 = sld [smem:[#allocation9_spill]] }
 0x31f   : > { %p3721_p1 = scmp.ne.s32.totalorder %s5069_s13, 1 }
 0x32c   : > { %1113 = vadd.xlane.f32.xlu1 %v1112_v5  ;;  %v1298_v5 = vld [vmem:[%s4523_s25 + $0x80] sm:$0xff] }
 0x33d   : > { %1007 = vrot.lane.b32.xlu1 %v4573_v10, %s4338_s15 }
 0x378   : > { %v780_v6 = vpop.xlane.xlu0 %779 }
 0x379   : > { %4220 = vrcp.f32 %v780_v6  ;;  %v1306_v6 = vld [vmem:[%s4523_s25 + $0xc0] sm:$0xff] }
 0x380   : > { %v892_v7 = vpop.xlane.xlu1 %891 }
 0x381   : > { %4222 = vrcp.f32 %v892_v7  ;;  %v1299_v7 = vld [vmem:[%s4523_s25 + $0x88] sm:$0xff] }
 0x384   : > { %v897_v14 = vpop.permute.xlu1 %896 }
 0x385   : > { %v902_v17 = vsel %vm789_vm4, %v897_v14, 0  ;;  %v1290_v14 = vld [vmem:[%s4523_s25 + $0x40] sm:$0xff] }
 0x386   : > { %v4221_v8 = vpop.eup %4220 }
 0x387   : > { %v782_v11 = vmul.f32 %v4221_v8, %v4213_v56  ;;  %v1307_v8 = vld [vmem:[%s4523_s25 + $0xc8] sm:$0xff] }
 0x388   : > { %v1003_v9 = vpop.xlane.xlu0 %1002 }
 0x389   : > { %v783_v15 = vpack.c.bf16 %v782_v11, %v782_v11  ;;  %4224 = vrcp.f32 %v1003_v9  ;;  %v3566_v9 = vcombine.low %v1298_v5, %v1306_v6  ;;  %v3568_v11 = vcombine.low %v1299_v7, %v1307_v8 }
 0x38c   : > { %v785_v12 = vpop.permute.xlu0 %784 }
 0x38d   : > { %v791_v13 = vsel %vm789_vm4, %v785_v12, 0  ;;  %v3569_v12 = vcombine.high %v1299_v7, %v1307_v8  ;;  %v1296_v7 = vld [vmem:[%s4523_s25 + $0x70] sm:$0xff]  ;;  %v1297_v8 = vld [vmem:[%s4523_s25 + $0x78] sm:$0xff] }
 0x38e   : > { %3943 = vmatpush3.bf16.msra.mxu0 %v791_v13  ;;  %v4223_v16 = vpop.eup %4222  ;;  %v1282_v13 = vld [vmem:[%s4523_s25] sm:$0xff] }
 0x38f   : > { %3954 = vmatprep.subr.bf16.mxu0 %v4326_v2  ;;  %v894_v10 = vmul.f32 %v4223_v16, %v4215_v59  ;;  %1614 = vmatprep.subr.bf16.mxu1 %v3569_v12  ;;  %v3551_v16 = vcombine.high %v1282_v13, %v1290_v14 }
 0x390   : > { %v1119_v24 = vpop.permute.xlu0 %1118 }
 0x391   : > { %3945 = vmatmul.mubr.msk.bf16.vlgmr.msra.gmra.mxu0 %vm724_vm3, %v783_v15  ;;  %v895_v18 = vpack.c.bf16 %v894_v10, %v894_v10  ;;  %v1124_v26 = vsel %vm789_vm4, %v1119_v24, 0  ;;  %v1283_v15 = vld [vmem:[%s4523_s25 + $0x8] sm:$0xff]  ;;  %v3550_v10 = vcombine.low %v1282_v13, %v1290_v14  ;;  %v1309_v24 = vld [vmem:[%s4523_s25 + $0xd8] sm:$0xff] }
 0x392   : > { %3955 = vmatpush3.bf16.msra.mxu0 %v902_v17  ;;  %3956 = vmatprep.mubr.msk.bf16.mxu0 %vm4327_vm1, %v4326_v2  ;;  %v1291_v17 = vld [vmem:[%s4523_s25 + $0x48] sm:$0xff] }
 0x393   : > { %3966 = vmatprep.subr.bf16.mxu0 %v4326_v2 }
 0x396   : > { %v4225_v19 = vpop.eup %4224 }
 0x397   : > { %v1005_v21 = vmul.f32 %v4225_v19, %v4217_v61  ;;  %v3553_v19 = vcombine.high %v1283_v15, %v1291_v17 }
 0x399   : > { %3957 = vmatmul.mubr.msk.bf16.vlgmr.msra.gmra.mxu0 %vm724_vm3, %v895_v18  ;;  %v1006_v25 = vpack.c.bf16 %v1005_v21, %v1005_v21  ;;  %v3552_v18 = vcombine.low %v1283_v15, %v1291_v17  ;;  %v1308_v21 = vld [vmem:[%s4523_s25 + $0xd0] sm:$0xff]  ;;  %v4085_v17 = vld [vmem:[%s4529_s20 + $0xf8] sm:$0xff]  }
 0x39a   : > { %3968 = vmatprep.mubr.msk.bf16.mxu0 %vm4327_vm1, %v4326_v2 }
 0x3b5   : > { %v1114_v20 = vpop.xlane.xlu1 %1113 }
 0x3b6   : > { %4226 = vrcp.f32 %v1114_v20  ;;  %v1300_v20 = vld [vmem:[%s4523_s25 + $0x90] sm:$0xff] }
 0x3b9   : > { %v1008_v22 = vpop.permute.xlu1 %1007 }
 0x3ba   : > { %v1013_v23 = vsel %vm789_vm4, %v1008_v22, 0  ;;  %v1301_v22 = vld [vmem:[%s4523_s25 + $0x98] sm:$0xff] }
 0x3bb   : > { %3967 = vmatpush3.bf16.msra.mxu0 %v1013_v23  ;;  %v3571_v23 = vcombine.high %v1300_v20, %v1308_v21 }
 0x3bc   : > { %3978 = vmatprep.subr.bf16.mxu0 %v4326_v2 }
 0x3be   : > { %3969 = vmatmul.mubr.msk.bf16.vlgmr.msra.gmra.mxu0 %vm724_vm3, %v1006_v25  ;;  %v4342_v25 = vmov 0  }
 0x3bf   : > { %3979 = vmatpush3.bf16.msra.mxu0 %v1124_v26  ;;  %3980 = vmatprep.mubr.msk.bf16.mxu0 %vm4327_vm1, %v4326_v2  ;;  %v3570_v26 = vcombine.low %v1300_v20, %v1308_v21  ;;  %v4089_v20 = vld [vmem:[%s4529_s20 + $0xf0] sm:$0xff]  }
 0x3c0   : > { %v4090_v21 = vld [vmem:[%s4529_s20 + $0x30] sm:$0xff]  }
 0x3c3   : > { %v4227_v27 = vpop.eup %4226 }
 0x3c4   : > { %v1116_v28 = vmul.f32 %v4227_v27, %v4219_v3  ;;  %v3572_v27 = vcombine.low %v1301_v22, %v1309_v24 }
 0x3c6   : > { %v1117_v29 = vpack.c.bf16 %v1116_v28, %v1116_v28  ;;  %v3573_v28 = vcombine.high %v1301_v22, %v1309_v24  ;;  %v4091_v22 = vld [vmem:[%s4529_s20 + $0xb0] sm:$0xff]   ;;  %v4093_v24 = vld [vmem:[%s4529_s20 + $0xe8] sm:$0xff]  }
 0x3c8   : > { %3981 = vmatmul.mubr.msk.bf16.vlgmr.msra.gmra.mxu0 %vm724_vm3, %v1117_v29 }
 0x3c9   : > { %1593 = vmatprep.mubr.bf16.mxu0 %v4342_v25 }
 0x451   : > { %v827_v30 = vpop.f32.mrf.mxu0 }
 0x453   : > { %v3946_v31 = vpop.f32.mrf.mxu0 }
 0x455   : > { %v830_v32 = vpop.f32.mrf.mxu0 }
 0x457   : > { %v3947_v33 = vpop.f32.mrf.mxu0 }
 0x458   : > { %v3548_v33 = vld [vmem:[%s633_s0] ss:$0 sm:$0xff] }
 0x459   : > { %v938_v34 = vpop.f32.mrf.mxu0 }
 0x45a   : > { %1167 = vrot.lane.b32.xlu1 %v938_v34, %s4339_s1 }
 0x45b   : > { %v3958_v35 = vpop.f32.mrf.mxu0 }
 0x45c   : > { %v3549_v35 = vld [vmem:[%s636_s27] ss:$0 sm:$0xff] }
 0x45d   : > { %v941_v36 = vpop.f32.mrf.mxu0 }
 0x45f   : > { %v3959_v37 = vpop.f32.mrf.mxu0 }
 0x460   : > { %v1284_v37 = vld [vmem:[%s4523_s25 + $0x10] sm:$0xff] }
 0x47e   : > { %v1049_v40 = vpop.f32.mrf.mxu0 }
 0x47f   : > { %1171 = vrot.lane.b32.xlu0 %v1049_v40, %s4340_s3  ;;  %v1293_v40 = vld [vmem:[%s4523_s25 + $0x58] sm:$0xff] }
 0x480   : > { %v3970_v41 = vpop.f32.mrf.mxu0 }
 0x482   : > { %v1052_v42 = vpop.f32.mrf.mxu0 }
 0x484   : > { %v3971_v43 = vpop.f32.mrf.mxu0 }
 0x485   : > { %v3555_v43 = vcombine.high %v1284_v37, %v1292_v38 }
 0x488   : > { %v1160_v44 = vpop.f32.mrf.mxu0 }
 0x489   : > { %1175 = vrot.lane.b32.xlu1 %v1160_v44, %s4341_s6  ;;  %v3557_v44 = vcombine.high %v1285_v39, %v1293_v40 }
 0x48a   : > { %v3982_v45 = vpop.f32.mrf.mxu0 }
 0x48b   : > { %v1302_v45 = vld [vmem:[%s4523_s25 + $0xa0] sm:$0xff] }
 0x48c   : > { %v1163_v46 = vpop.f32.mrf.mxu0 }
 0x48d   : > { %v1310_v46 = vld [vmem:[%s4523_s25 + $0xe0] sm:$0xff] }
 0x48e   : > { %v3983_v47 = vpop.f32.mrf.mxu0 }
 0x48f   : > { %v1303_v47 = vld [vmem:[%s4523_s25 + $0xa8] sm:$0xff] }
 0x4cc   : > { %v1168_v48 = vpop.permute.xlu1 %1167 }
 0x4cd   : > { %v1178_v2 = vsel %vm724_vm3, %v827_v30, %v1168_v48  ;;  %v1311_v48 = vld [vmem:[%s4523_s25 + $0xe8] sm:$0xff] }
 0x4f1   : > { %v1172_v49 = vpop.permute.xlu0 %1171 }
 0x4f2   : > { %v1180_v50 = vsel %vm1179_vm5, %v1178_v2, %v1172_v49  ;;  %v3554_v49 = vcombine.low %v1284_v37, %v1292_v38  ;;  %v3556_v2 = vcombine.low %v1285_v39, %v1293_v40  ;;  %v4106_v37 = vld [vmem:[%s4529_s20 + $0x10] sm:$0xff]   ;;  %v4108_v39 = vld [vmem:[%s4529_s20 + $0x48] sm:$0xff]  }
 0x4f3   : > { %v4107_v38 = vld [vmem:[%s4529_s20 + $0x90] sm:$0xff]   ;;  %v4109_v40 = vld [vmem:[%s4529_s20 + $0xc8] sm:$0xff]  }
 0x4fb   : > { %v1176_v51 = vpop.permute.xlu1 %1175 }
 0x4fc   : > { %v1182_v52 = vsel %vm1181_vm6, %v1180_v50, %v1176_v51  ;;  %v3575_v50 = vcombine.high %v1302_v45, %v1310_v46  ;;  %v3577_v51 = vcombine.high %v1303_v47, %v1311_v48 }
 0x4fd   : > { %v1183_v53 = vpack.c.bf16 %v1182_v52, %v1182_v52  ;;  %v1286_v52 = vld [vmem:[%s4523_s25 + $0x20] sm:$0xff] }
 0x4ff   : > { %3989 = vmatmul.mubr.msk.bf16.vlgmr.msra.gmra.mxu1 %vm676_vm2, %v1183_v53  ;;  %v1294_v53 = vld [vmem:[%s4523_s25 + $0x60] sm:$0xff] }
 0x500   : > { %1615 = vmatpush1.bf16.msra.mxu1 %v3568_v11  ;;  %1634 = vmatprep.mubr.bf16.mxu1 %v4342_v25 }
 0x501   : > { %1616 = vmatprep.subr.bf16.mxu1 %v3553_v19  ;;  %v4088_v19 = vld [vmem:[%s4529_s20 + $0x70] sm:$0xff]  }
 0x504   : > { %1617 = vmatpush1.bf16.msra.mxu1 %v3552_v18  ;;  %v4087_v18 = vld [vmem:[%s4529_s20 + $0xb8] sm:$0xff]  }
 0x505   : > { %1696 = vmatprep.subr.bf16.mxu1 %v3573_v28  ;;  %v4097_v28 = vld [vmem:[%s4529_s20 + $0xe0] sm:$0xff]  }
 0x5bf   : > { %v1244_v55 = vpop.f32.mrf.mxu1 }
 0x5c0   : > { %v1245_v56 = vadd.f32 %v3544_v54, %v1244_v55  ;;  %v1287_v54 = vld [vmem:[%s4523_s25 + $0x28] sm:$0xff] }
 0x5c1   : > { %v3990_v57 = vpop.f32.mrf.mxu1  ;;  %v1295_v55 = vld [vmem:[%s4523_s25 + $0x68] sm:$0xff] }
 0x5c2   : > { %v1250_v58 = vadd.f32 %v1245_v56, %v4557_v4  ;;  %v3567_v4 = vcombine.high %v1298_v5, %v1306_v6  ;;  %v3574_v56 = vcombine.low %v1302_v45, %v1310_v46  ;;  %v3576_v57 = vcombine.low %v1303_v47, %v1311_v48  ;;  %v1288_v6 = vld [vmem:[%s4523_s25 + $0x30] sm:$0xff]  ;;  %v4113_v45 = vld [vmem:[%s4529_s20 + $0xc0] sm:$0xff]   ;;  %v4116_v48 = vld [vmem:[%s4529_s20 + $0x178] sm:$0xff]  }
 0x5c3   : > { %v1247_v59 = vpop.f32.mrf.mxu1  ;;  %v3563_v12 = vcombine.high %v1288_v6, %v1296_v7  ;;  %v3562_v14 = vcombine.low %v1288_v6, %v1296_v7  ;;  %v4114_v46 = vld [vmem:[%s4529_s20] sm:$0xff]  }
 0x5c4   : > { %v1253_v60 = vsel %vm676_vm2, %v1250_v58, 0.0  ;;  %1573 = vmatprep.subr.bf16.mxu0 %v3567_v4  ;;  %v3561_v59 = vcombine.high %v1287_v54, %v1295_v55  ;;  %v1289_v4 = vld [vmem:[%s4523_s25 + $0x38] sm:$0xff]  ;;  %v4115_v47 = vld [vmem:[%s4529_s20 + $0x80] sm:$0xff]  }
 0x5c5   : > { %1254 = vadd.xlane.f32.xlu0 %v1253_v60  ;;  %v3991_v61 = vpop.f32.mrf.mxu1  ;;  %1574 = vmatpush1.bf16.msra.mxu0 %v3566_v9  ;;  %v1304_v60 = vld [vmem:[%s4523_s25 + $0xb0] sm:$0xff]  ;;  %v3565_v13 = vcombine.high %v1289_v4, %v1297_v8  ;;  %v3564_v15 = vcombine.low %v1289_v4, %v1297_v8 }
 0x5c6   : > { %1575 = vmatprep.subr.bf16.mxu0 %v3551_v16  ;;  %v1312_v61 = vld [vmem:[%s4523_s25 + $0xf0] sm:$0xff]  ;;  %v4084_v16 = vld [vmem:[%s4529_s20 + $0x78] sm:$0xff]  }
 0x5c7   : > { %v3578_v9 = vcombine.low %v1304_v60, %v1312_v61 }
 0x5c9   : > { %1576 = vmatpush1.bf16.msra.mxu0 %v3550_v10  ;;  %v4086_v10 = vld [vmem:[%s4529_s20 + $0x38] sm:$0xff]  }
 0x5ca   : > { %1655 = vmatprep.subr.bf16.mxu0 %v3571_v23  ;;  %v4092_v23 = vld [vmem:[%s4529_s20 + $0x68] sm:$0xff]  }
 0x64e   : > { %v1255_v62 = vpop.xlane.xlu0 %1254 }
 0x64f   : > { %v1257_v63 = vmul.f32 0.03125, %v1255_v62  ;;  %v1305_v62 = vld [vmem:[%s4523_s25 + $0xb8] sm:$0xff] }
 0x651   : > { %v1258_v0 = vsub.f32 %v1250_v58, %v1257_v63  ;;  %v3559_v58 = vcombine.high %v1286_v52, %v1294_v53  ;;  %v1313_v63 = vld [vmem:[%s4523_s25 + $0xf8] sm:$0xff]  ;;  %s5067_s25 = sld [smem:[#allocation19_spill]] }
 0x652   : > { %v3581_v5 = vcombine.high %v1305_v62, %v1313_v63  ;;  %v3580_v11 = vcombine.low %v1305_v62, %v1313_v63 }
 0x653   : > { %v1259_v1 = vmul.f32 %v1258_v0, %v1258_v0 }
 0x655   : > { %v1260_v3 = vsel %vm676_vm2, %v1259_v1, 0.0  ;;  %v3560_v1 = vcombine.low %v1287_v54, %v1295_v55 }
 0x656   : > { %1261 = vadd.xlane.f32.xlu1 %v1260_v3  ;;  %v3579_v3 = vcombine.high %v1304_v60, %v1312_v61 }
 0x6df   : > { %v1262_v29 = vpop.xlane.xlu1 %1261 }
 0x6e0   : > { %v1263_v30 = vmul.f32 0.03125, %v1262_v29  ;;  %v4098_v29 = vld [vmem:[%s4529_s20 + $0x20] sm:$0xff]  }
 0x6e2   : > { %v1264_v31 = vadd.f32 1e-05, %v1263_v30  ;;  %v4099_v30 = vld [vmem:[%s4529_s20 + $0xa0] sm:$0xff]  }
 0x6e4   : > { %4228 = vrsqrt.f32 %v1264_v31  ;;  %v4100_v31 = vld [vmem:[%s4529_s20 + $0x58] sm:$0xff]  }
 0x6f1   : > { %v4229_v32 = vpop.eup %4228 }
 0x6f2   : > { %v1266_v34 = vmul.f32 %v4229_v32, %v1258_v0  ;;  %v3558_v0 = vcombine.low %v1286_v52, %v1294_v53  ;;  %v4101_v32 = vld [vmem:[%s4529_s20 + $0xd8] sm:$0xff]   ;;  %v4755_v52 = vld [vmem:[%s5067_s25 + $0x8] sm:$0xff] }
 0x6f4   : > { %v1273_v36 = vmul.f32 %v3548_v33, %v1266_v34  ;;  %v4102_v33 = vld [vmem:[%s4529_s20 + $0x18] sm:$0xff]  }
 0x6f5   : > { %v4103_v34 = vld [vmem:[%s4529_s20 + $0x98] sm:$0xff]  }
 0x6f6   : > { %v4673_v41 = vadd.f32 %v3549_v35, %v1273_v36  ;;  %v4104_v35 = vld [vmem:[%s4529_s20 + $0x50] sm:$0xff]  }
 0x6f7   : > { %v4105_v36 = vld [vmem:[%s4529_s20 + $0xd0] sm:$0xff]  }
 0x6f8   : > { %v4677_v42 = vpack.c.bf16 %v4673_v41, %v4673_v41 }
 0x6fa   : > { %3582 = vmatmul.mubr.msk.bf16.vlgmr.msra.gmra.mxu0 %vm676_vm2, %v4677_v42  ;;  %3583 = vmatmul.mubr.msk.bf16.vlgmr.msra.gmra.mxu1 %vm676_vm2, %v4677_v42 }
 0x6fb   : > { %1656 = vmatpush1.bf16.msra.mxu0 %v3570_v26  ;;  %1697 = vmatpush1.bf16.msra.mxu1 %v3572_v27  ;;  %v4095_v26 = vld [vmem:[%s4529_s20 + $0xa8] sm:$0xff]   ;;  %v4096_v27 = vld [vmem:[%s4529_s20 + $0x60] sm:$0xff]  }
 0x6fc   : > { %1657 = vmatprep.subr.bf16.mxu0 %v3555_v43  ;;  %1698 = vmatprep.subr.bf16.mxu1 %v3557_v44  ;;  %v4111_v43 = vld [vmem:[%s4529_s20 + $0x88] sm:$0xff]   ;;  %v4112_v44 = vld [vmem:[%s4529_s20 + $0x40] sm:$0xff]  }
 0x6fd   : > { %1675 = vmatprep.mubr.bf16.mxu0 %v4342_v25  ;;  %1716 = vmatprep.mubr.bf16.mxu1 %v4342_v25 }
 0x6ff   : > { %1658 = vmatpush1.bf16.msra.mxu0 %v3554_v49  ;;  %1699 = vmatpush1.bf16.msra.mxu1 %v3556_v2  ;;  %v4117_v49 = vld [vmem:[%s4529_s20 + $0x1f8] sm:$0xff]   ;;  %v1318_v2 = vlaneseq }
 0x700   : > { %1737 = vmatprep.subr.bf16.mxu0 %v3575_v50  ;;  %1778 = vmatprep.subr.bf16.mxu1 %v3577_v51 }
 0x701   : > { %v4751_v50 = vshrl.u32 %v1318_v2, 7 }
 0x702   : > { %3584 = vmatmul.mubr.msk.bf16.vlgmr.msra.gmra.mxu0 %vm676_vm2, %v4677_v42  ;;  %3585 = vmatmul.mubr.msk.bf16.vlgmr.msra.gmra.mxu1 %vm676_vm2, %v4677_v42 }
 0x703   : > { %1738 = vmatpush1.bf16.msra.mxu0 %v3574_v56  ;;  %1779 = vmatpush1.bf16.msra.mxu1 %v3576_v57  ;;  %v1344_v51 = vsub.s32 6, %v4751_v50  ;;  %v1320_v54 = vsub.s32 0, %v4751_v50  ;;  %v1328_v55 = vsub.s32 2, %v4751_v50  ;;  %v4765_v56 = vld [vmem:[%s5067_s25] sm:$0xff]  ;;  %v1324_v57 = vsub.s32 1, %v4751_v50 }
 0x704   : > { %1739 = vmatprep.subr.bf16.mxu0 %v3559_v58  ;;  %1780 = vmatprep.subr.bf16.mxu1 %v3561_v59  ;;  %v1332_v58 = vsub.s32 3, %v4751_v50  ;;  %v1340_v8 = vsub.s32 5, %v4751_v50 }
 0x705   : > { %1757 = vmatprep.mubr.bf16.mxu0 %v4342_v25  ;;  %1798 = vmatprep.mubr.bf16.mxu1 %v4342_v25  ;;  %v4760_v53 = vrot.slane %v4755_v52, %v1344_v51  ;;  %v1321_v59 = vrot.slane %v4765_v56, %v1320_v54  ;;  %v1329_v60 = vrot.slane %v4765_v56, %v1328_v55 }
 0x706   : > { %v1325_v61 = vrot.slane %v4765_v56, %v1324_v57  ;;  %v1333_v62 = vrot.slane %v4765_v56, %v1332_v58 }
 0x707   : > { %1740 = vmatpush1.bf16.msra.mxu0 %v3558_v0  ;;  %1781 = vmatpush1.bf16.msra.mxu1 %v3560_v1 }
 0x708   : > { %1819 = vmatprep.subr.bf16.mxu0 %v3579_v3  ;;  %1860 = vmatprep.subr.bf16.mxu1 %v3581_v5 }
 0x70a   : > { %3586 = vmatmul.mubr.msk.bf16.vlgmr.msra.gmra.mxu0 %vm676_vm2, %v4677_v42  ;;  %3587 = vmatmul.mubr.msk.bf16.vlgmr.msra.gmra.mxu1 %vm676_vm2, %v4677_v42 }
 0x70b   : > { %1820 = vmatpush1.bf16.msra.mxu0 %v3578_v9  ;;  %1861 = vmatpush1.bf16.msra.mxu1 %v3580_v11  ;;  %v1348_v9 = vsub.s32 7, %v4751_v50 }
 0x70c   : > { %1821 = vmatprep.subr.bf16.mxu0 %v3563_v12  ;;  %1862 = vmatprep.subr.bf16.mxu1 %v3565_v13 }
 0x70d   : > { %1839 = vmatprep.mubr.bf16.mxu0 %v4342_v25  ;;  %1880 = vmatprep.mubr.bf16.mxu1 %v4342_v25  ;;  %v4094_v25 = vld [vmem:[%s4529_s20 + $0x28] sm:$0xff]  }
 0x70f   : > { %1822 = vmatpush1.bf16.msra.mxu0 %v3562_v14  ;;  %1863 = vmatpush1.bf16.msra.mxu1 %v3564_v15 }
 0x710   : > { %3752 = vmatprep.subr.bf16.mxu0 %v4084_v16  ;;  %3774 = vmatprep.subr.bf16.mxu1 %v4085_v17 }
 0x712   : > { %3588 = vmatmul.mubr.msk.bf16.vlgmr.msra.gmra.mxu0 %vm676_vm2, %v4677_v42  ;;  %3589 = vmatmul.mubr.msk.bf16.vlgmr.msra.gmra.mxu1 %vm676_vm2, %v4677_v42  ;;  %v4110_v42 = vld [vmem:[%s4529_s20 + $0x8] sm:$0xff]  }
 0x713   : > { %3753 = vmatpush3.bf16.msra.mxu0 %v4086_v10  ;;  %3775 = vmatpush3.bf16.msra.mxu1 %v4087_v18 }
 0x714   : > { %3754 = vmatprep.subr.bf16.mxu0 %v4088_v19  ;;  %3776 = vmatprep.subr.bf16.mxu1 %v4089_v20  ;;  %v1341_v20 = vrot.slane %v4765_v56, %v1340_v8 }
 0x717   : > { %3755 = vmatpush3.bf16.msra.mxu0 %v4090_v21  ;;  %3777 = vmatpush3.bf16.msra.mxu1 %v4091_v22  ;;  %v1349_v21 = vrot.slane %v4765_v56, %v1348_v9  ;;  %v4118_v22 = vld [vmem:[%s4529_s20 + $0x138] sm:$0xff]  }
 0x718   : > { %3756 = vmatprep.subr.bf16.mxu0 %v4092_v23  ;;  %3778 = vmatprep.subr.bf16.mxu1 %v4093_v24  ;;  %v4119_v23 = vld [vmem:[%s4529_s20 + $0x1b8] sm:$0xff]  }
 0x71b   : > { %3757 = vmatpush3.bf16.msra.mxu0 %v4094_v25  ;;  %3779 = vmatpush3.bf16.msra.mxu1 %v4095_v26 }
 0x71c   : > { %3758 = vmatprep.subr.bf16.mxu0 %v4096_v27  ;;  %3780 = vmatprep.subr.bf16.mxu1 %v4097_v28  ;;  %v4120_v28 = vld [vmem:[%s4529_s20 + $0x170] sm:$0xff]  }
 0x71f   : > { %3759 = vmatpush3.bf16.msra.mxu0 %v4098_v29  ;;  %3781 = vmatpush3.bf16.msra.mxu1 %v4099_v30  ;;  %v4121_v29 = vld [vmem:[%s4529_s20 + $0x1f0] sm:$0xff]  }
 0x720   : > { %3760 = vmatprep.subr.bf16.mxu0 %v4100_v31  ;;  %3782 = vmatprep.subr.bf16.mxu1 %v4101_v32 }
 0x723   : > { %3761 = vmatpush3.bf16.msra.mxu0 %v4102_v33  ;;  %3783 = vmatpush3.bf16.msra.mxu1 %v4103_v34  ;;  %v4122_v34 = vld [vmem:[%s4529_s20 + $0x130] sm:$0xff]  }
 0x724   : > { %3762 = vmatprep.subr.bf16.mxu0 %v4104_v35  ;;  %3784 = vmatprep.subr.bf16.mxu1 %v4105_v36  ;;  %v4123_v35 = vld [vmem:[%s4529_s20 + $0x1b0] sm:$0xff]  }
 0x727   : > { %3763 = vmatpush3.bf16.msra.mxu0 %v4106_v37  ;;  %3785 = vmatpush3.bf16.msra.mxu1 %v4107_v38  ;;  %v4124_v38 = vld [vmem:[%s4529_s20 + $0x168] sm:$0xff]  }
 0x728   : > { %3764 = vmatprep.subr.bf16.mxu0 %v4108_v39  ;;  %3786 = vmatprep.subr.bf16.mxu1 %v4109_v40  ;;  %v4125_v39 = vld [vmem:[%s4529_s20 + $0x1e8] sm:$0xff]  }
 0x72b   : > { %3765 = vmatpush3.bf16.msra.mxu0 %v4110_v42  ;;  %3787 = vmatpush3.bf16.msra.mxu1 %v4111_v43 }
 0x72c   : > { %3766 = vmatprep.subr.bf16.mxu0 %v4112_v44  ;;  %3788 = vmatprep.subr.bf16.mxu1 %v4113_v45 }
 0x72f   : > { %3767 = vmatpush3.bf16.msra.mxu0 %v4114_v46  ;;  %3789 = vmatpush3.bf16.msra.mxu1 %v4115_v47  ;;  %v4126_v47 = vld [vmem:[%s4529_s20 + $0x128] sm:$0xff]  }
 0x730   : > { %3796 = vmatprep.subr.bf16.mxu0 %v4116_v48  ;;  %3818 = vmatprep.subr.bf16.mxu1 %v4117_v49  ;;  %v4127_v48 = vld [vmem:[%s4529_s20 + $0x1a8] sm:$0xff]  }
 0x7ba   : > { %v1595_v63 = vpop.f32.mrf.mxu0  ;;  %v1636_v0 = vpop.f32.mrf.mxu1 }
 0x7bb   : > { %v1596_v1 = vadd.f32 %v1595_v63, %v1321_v59  ;;  %v1637_v3 = vadd.f32 %v1636_v0, %v1329_v60  ;;  %v4128_v59 = vld [vmem:[%s4529_s20 + $0x160] sm:$0xff]   ;;  %v1336_v63 = vsub.s32 4, %v4751_v50 }
 0x7bc   : > { %v1597_v5 = vpop.f32.mrf.mxu0  ;;  %v1638_v6 = vpop.f32.mrf.mxu1  ;;  %v4129_v60 = vld [vmem:[%s4529_s20 + $0x1e0] sm:$0xff]  }
 0x7bd   : > { %v1598_v7 = vadd.f32 %v1597_v5, %v1325_v61  ;;  %v1639_v4 = vadd.f32 %v1638_v6, %v1333_v62  ;;  %v1889_v11 = vmax.f32 %v1596_v1, 0.0  ;;  %v1891_v12 = vmax.f32 %v1637_v3, 0.0  ;;  %v4130_v0 = vld [vmem:[%s4529_s20 + $0x120] sm:$0xff]   ;;  %v4132_v6 = vld [vmem:[%s4529_s20 + $0x158] sm:$0xff]  }
 0x7be   : > { %v1599_v13 = vpop.f32.mrf.mxu0  ;;  %v1640_v14 = vpop.f32.mrf.mxu1  ;;  %v4131_v1 = vld [vmem:[%s4529_s20 + $0x1a0] sm:$0xff]  }
 0x7bf   : > { %v1890_v15 = vmax.f32 %v1598_v7, 0.0  ;;  %v1892_v16 = vmax.f32 %v1639_v4, 0.0  ;;  %v1905_v24 = vpack.c.bf16 %v1889_v11, %v1889_v11  ;;  %v1907_v25 = vpack.c.bf16 %v1891_v12, %v1891_v12  ;;  %v4133_v7 = vld [vmem:[%s4529_s20 + $0x1d8] sm:$0xff]  }
 0x7c0   : > { %v1600_v17 = vpop.f32.mrf.mxu0  ;;  %v1641_v10 = vpop.f32.mrf.mxu1  ;;  %v1369_v4 = vrot.slane %v4755_v52, %v1336_v63  ;;  %v4134_v13 = vld [vmem:[%s4529_s20 + $0x118] sm:$0xff]  }
 0x7c1   : > { %v1906_v18 = vpack.c.bf16 %v1890_v15, %v1890_v15  ;;  %v1908_v19 = vpack.c.bf16 %v1892_v16, %v1892_v16  ;;  %v4135_v14 = vld [vmem:[%s4529_s20 + $0x198] sm:$0xff]   ;;  %v4136_v17 = vld [vmem:[%s4529_s20 + $0x150] sm:$0xff]  }
 0x7c2   : > { %v4791_v26 = vpop.f32.mrf.mxu0  ;;  %v4793_v27 = vpop.f32.mrf.mxu1  ;;  %v4137_v10 = vld [vmem:[%s4529_s20 + $0x1d0] sm:$0xff]  }
 0x7c3   : > { %2984 = vmatprep.mubr.bf16.mxu0 %v1906_v18  ;;  %3024 = vmatprep.mubr.bf16.mxu1 %v1908_v19 }
 0x7c4   : > { %v1679_v30 = vpop.f32.mrf.mxu0  ;;  %v1720_v31 = vpop.f32.mrf.mxu1  ;;  %2985 = vmatmul.mubr.bf16.vlgmr.msra.gmra.mxu0 %v1905_v24  ;;  %3025 = vmatmul.mubr.bf16.vlgmr.msra.gmra.mxu1 %v1907_v25  ;;  %v1337_v24 = vrot.slane %v4765_v56, %v1336_v63  ;;  %v1345_v25 = vrot.slane %v4765_v56, %v1344_v51  ;;  %v4142_v51 = vld [vmem:[%s4529_s20 + $0x108] sm:$0xff]  }
 0x7c5   : > { %v1680_v32 = vadd.f32 %v1679_v30, %v1341_v20  ;;  %v1721_v33 = vadd.f32 %v1720_v31, %v1349_v21  ;;  %3797 = vmatpush3.bf16.msra.mxu0 %v4118_v22  ;;  %3819 = vmatpush3.bf16.msra.mxu1 %v4119_v23  ;;  %v4138_v22 = vld [vmem:[%s4529_s20 + $0x110] sm:$0xff]   ;;  %v4141_v30 = vld [vmem:[%s4529_s20 + $0x1c8] sm:$0xff]   ;;  %v1357_v31 = vrot.slane %v4755_v52, %v1324_v57  ;;  %v4144_v57 = vld [vmem:[%s4529_s20 + $0x140] sm:$0xff]  }
 0x7c6   : > { %v1681_v36 = vpop.f32.mrf.mxu0  ;;  %v1722_v37 = vpop.f32.mrf.mxu1  ;;  %3798 = vmatprep.subr.bf16.mxu0 %v4120_v28  ;;  %3820 = vmatprep.subr.bf16.mxu1 %v4121_v29  ;;  %v4139_v23 = vld [vmem:[%s4529_s20 + $0x190] sm:$0xff]   ;;  %v4143_v56 = vld [vmem:[%s4529_s20 + $0x188] sm:$0xff]  }
 0x7c7   : > { %v1894_v40 = vmax.f32 %v1680_v32, 0.0  ;;  %v1896_v42 = vmax.f32 %v1721_v33, 0.0  ;;  %v1365_v32 = vrot.slane %v4755_v52, %v1332_v58  ;;  %v1719_v36 = vadd.f32 %v4793_v27, %v1345_v25  ;;  %v4145_v37 = vld [vmem:[%s4529_s20 + $0x1c0] sm:$0xff]   ;;  %v4149_v27 = vld [vmem:[%s4529_s20 + $0x2f8] sm:$0xff]   ;;  %v4171_v25 = vld [vmem:[%s4529_s20 + $0x290] sm:$0xff]  }
 0x7c8   : > { %v1682_v43 = vpop.f32.mrf.mxu0  ;;  %v1723_v44 = vpop.f32.mrf.mxu1 }
 0x7c9   : > { %v1910_v45 = vpack.c.bf16 %v1894_v40, %v1894_v40  ;;  %v1912_v46 = vpack.c.bf16 %v1896_v42, %v1896_v42  ;;  %3799 = vmatpush3.bf16.msra.mxu0 %v4122_v34  ;;  %3821 = vmatpush3.bf16.msra.mxu1 %v4123_v35  ;;  %v1678_v35 = vadd.f32 %v4791_v26, %v1337_v24  ;;  %v4147_v40 = vld [vmem:[%s4529_s20 + $0x180] sm:$0xff]   ;;  %v1895_v43 = vmax.f32 %v1719_v36, 0.0  ;;  %v4148_v26 = vld [vmem:[%s4529_s20 + $0x278] sm:$0xff]  }
 0x7ca   : > { %v4803_v49 = vpop.f32.mrf.mxu0  ;;  %v4805_v2 = vpop.f32.mrf.mxu1  ;;  %3800 = vmatprep.subr.bf16.mxu0 %v4124_v38  ;;  %3822 = vmatprep.subr.bf16.mxu1 %v4125_v39  ;;  %v4146_v39 = vld [vmem:[%s4529_s20 + $0x100] sm:$0xff]   ;;  %v1353_v24 = vrot.slane %v4755_v52, %v1320_v54  ;;  %v1381_v54 = vrot.slane %v4755_v52, %v1348_v9 }
 0x7cb   : > { %3064 = vmatprep.mubr.bf16.mxu0 %v1910_v45  ;;  %3104 = vmatprep.mubr.bf16.mxu1 %v1912_v46  ;;  %v1893_v42 = vmax.f32 %v1678_v35, 0.0  ;;  %v4150_v46 = vld [vmem:[%s4529_s20 + $0x238] sm:$0xff]  }
 0x7cc   : > { %v1761_v61 = vpop.f32.mrf.mxu0  ;;  %v1802_v62 = vpop.f32.mrf.mxu1 }
 0x7cd   : > { %3801 = vmatpush3.bf16.msra.mxu0 %v4126_v47  ;;  %3823 = vmatpush3.bf16.msra.mxu1 %v4127_v48  ;;  %v1762_v38 = vadd.f32 %v1761_v61, %v1357_v31  ;;  %v1803_v58 = vadd.f32 %v1802_v62, %v1365_v32  ;;  %v1909_v47 = vpack.c.bf16 %v1893_v42, %v1893_v42  ;;  %v4152_v61 = vld [vmem:[%s4529_s20 + $0x270] sm:$0xff]   ;;  %v4174_v31 = vld [vmem:[%s4529_s20 + $0x208] sm:$0xff]  }
 0x7ce   : > { %v1763_v3 = vpop.f32.mrf.mxu0  ;;  %v1804_v5 = vpop.f32.mrf.mxu1  ;;  %3802 = vmatprep.subr.bf16.mxu0 %v4128_v59  ;;  %3824 = vmatprep.subr.bf16.mxu1 %v4129_v60  ;;  %v1911_v48 = vpack.c.bf16 %v1895_v43, %v1895_v43  ;;  %v4151_v59 = vld [vmem:[%s4529_s20 + $0x2b8] sm:$0xff]   ;;  %v4153_v62 = vld [vmem:[%s4529_s20 + $0x2f0] sm:$0xff]   ;;  %v1760_v32 = vadd.f32 %v4803_v49, %v1353_v24  ;;  %v4179_v49 = vld [vmem:[%s4529_s20 + $0x280] sm:$0xff]  }
 0x7cf   : > { %v1898_v44 = vmax.f32 %v1762_v38, 0.0  ;;  %v1900_v45 = vmax.f32 %v1803_v58, 0.0  ;;  %v4156_v3 = vld [vmem:[%s4529_s20 + $0x268] sm:$0xff]   ;;  %v4184_v58 = vld [vmem:[%s4529_s20 + $0x370] sm:$0xff]  }
 0x7d0   : > { %v1764_v11 = vpop.f32.mrf.mxu0  ;;  %v1805_v12 = vpop.f32.mrf.mxu1  ;;  %v4157_v5 = vld [vmem:[%s4529_s20 + $0x2e8] sm:$0xff]   ;;  %v1897_v9 = vmax.f32 %v1760_v32, 0.0  ;;  %v4186_v43 = vld [vmem:[%s4529_s20 + $0x330] sm:$0xff]  }
 0x7d1   : > { %3803 = vmatpush3.bf16.msra.mxu0 %v4130_v0  ;;  %3825 = vmatpush3.bf16.msra.mxu1 %v4131_v1  ;;  %v1914_v60 = vpack.c.bf16 %v1898_v44, %v1898_v44  ;;  %v1916_v63 = vpack.c.bf16 %v1900_v45, %v1900_v45  ;;  %v4154_v0 = vld [vmem:[%s4529_s20 + $0x230] sm:$0xff]   ;;  %v4161_v11 = vld [vmem:[%s4529_s20 + $0x2e0] sm:$0xff]   ;;  %v4189_v44 = vld [vmem:[%s4529_s20 + $0x3e8] sm:$0xff]  }
 0x7d2   : > { %v1841_v15 = vpop.f32.mrf.mxu0  ;;  %v1882_v16 = vpop.f32.mrf.mxu1  ;;  %3804 = vmatprep.subr.bf16.mxu0 %v4132_v6  ;;  %3826 = vmatprep.subr.bf16.mxu1 %v4133_v7  ;;  %v4155_v1 = vld [vmem:[%s4529_s20 + $0x2b0] sm:$0xff]   ;;  %v4158_v6 = vld [vmem:[%s4529_s20 + $0x228] sm:$0xff]   ;;  %v4162_v12 = vld [vmem:[%s4529_s20 + $0x220] sm:$0xff]  }
 0x7d3   : > { %v4819_v18 = vadd.f32 %v1841_v15, %v1369_v4  ;;  %v4822_v19 = vadd.f32 %v1882_v16, %v4760_v53  ;;  %v4140_v53 = vld [vmem:[%s4529_s20 + $0x148] sm:$0xff]   ;;  %v4160_v4 = vld [vmem:[%s4529_s20 + $0x260] sm:$0xff]   ;;  %v4165_v15 = vld [vmem:[%s4529_s20 + $0x2d8] sm:$0xff]  }
 0x7d4   : > { %v4824_v20 = vpop.f32.mrf.mxu0  ;;  %v4826_v21 = vpop.f32.mrf.mxu1  ;;  %v4159_v7 = vld [vmem:[%s4529_s20 + $0x2a8] sm:$0xff]   ;;  %v4166_v16 = vld [vmem:[%s4529_s20 + $0x218] sm:$0xff]  }
 0x7d5   : > { %3805 = vmatpush3.bf16.msra.mxu0 %v4134_v13  ;;  %3827 = vmatpush3.bf16.msra.mxu1 %v4135_v14  ;;  %v4163_v13 = vld [vmem:[%s4529_s20 + $0x2a0] sm:$0xff]   ;;  %v4164_v14 = vld [vmem:[%s4529_s20 + $0x258] sm:$0xff]   ;;  %v4190_v45 = vld [vmem:[%s4529_s20 + $0x328] sm:$0xff]  }
 0x7d6   : > { %v1845_v28 = vpop.f32.mrf.mxu0  ;;  %v1886_v29 = vpop.f32.mrf.mxu1  ;;  %3806 = vmatprep.subr.bf16.mxu0 %v4136_v17  ;;  %3828 = vmatprep.subr.bf16.mxu1 %v4137_v10  ;;  %v4167_v17 = vld [vmem:[%s4529_s20 + $0x298] sm:$0xff]   ;;  %v4168_v10 = vld [vmem:[%s4529_s20 + $0x250] sm:$0xff]  }
 0x7d7   : > { %v4172_v28 = vld [vmem:[%s4529_s20 + $0x248] sm:$0xff]   ;;  %v1361_v29 = vrot.slane %v4755_v52, %v1328_v55 }
 0x7d8   : > { %v1846_v33 = vpop.f32.mrf.mxu0  ;;  %v1887_v34 = vpop.f32.mrf.mxu1  ;;  %v4175_v55 = vld [vmem:[%s4529_s20 + $0x288] sm:$0xff]  }
 0x7d9   : > { %3807 = vmatpush3.bf16.msra.mxu0 %v4138_v22  ;;  %3829 = vmatpush3.bf16.msra.mxu1 %v4139_v23  ;;  %v4169_v22 = vld [vmem:[%s4529_s20 + $0x2d0] sm:$0xff]   ;;  %v4176_v33 = vld [vmem:[%s4529_s20 + $0x240] sm:$0xff]   ;;  %v1801_v34 = vadd.f32 %v4805_v2, %v1361_v29  ;;  %v4181_v2 = vld [vmem:[%s4529_s20 + $0x3f8] sm:$0xff]  }
 0x7da   : > { %3808 = vmatprep.subr.bf16.mxu0 %v4140_v53  ;;  %3830 = vmatprep.subr.bf16.mxu1 %v4141_v30  ;;  %v4170_v23 = vld [vmem:[%s4529_s20 + $0x210] sm:$0xff]   ;;  %v4173_v53 = vld [vmem:[%s4529_s20 + $0x2c8] sm:$0xff]   ;;  %v1373_v30 = vrot.slane %v4755_v52, %v1340_v8  ;;  %v1885_v52 = vadd.f32 %v4826_v21, %v1381_v54  ;;  %v4178_v8 = vld [vmem:[%s4529_s20 + $0x200] sm:$0xff]  }
 0x7db   : > { %v1899_v35 = vmax.f32 %v1801_v34, 0.0  ;;  %v4183_v21 = vld [vmem:[%s4529_s20 + $0x3b8] sm:$0xff]  }
 0x7dc   : > { %v1844_v50 = vadd.f32 %v4824_v20, %v1373_v30  ;;  %v4182_v20 = vld [vmem:[%s4529_s20 + $0x338] sm:$0xff]  }
 0x7dd   : > { %3809 = vmatpush3.bf16.msra.mxu0 %v4142_v51  ;;  %3831 = vmatpush3.bf16.msra.mxu1 %v4143_v56  ;;  %v4177_v51 = vld [vmem:[%s4529_s20 + $0x2c0] sm:$0xff]   ;;  %v4180_v56 = vld [vmem:[%s4529_s20 + $0x378] sm:$0xff]   ;;  %v1915_v38 = vpack.c.bf16 %v1899_v35, %v1899_v35 }
 0x7de   : > { %3810 = vmatprep.subr.bf16.mxu0 %v4144_v57  ;;  %3832 = vmatprep.subr.bf16.mxu1 %v4145_v37  ;;  %v1902_v36 = vmax.f32 %v1844_v50, 0.0  ;;  %v1904_v57 = vmax.f32 %v1885_v52, 0.0  ;;  %v1913_v37 = vpack.c.bf16 %v1897_v9, %v1897_v9 }
 0x7e0   : > { %v1920_v42 = vpack.c.bf16 %v1904_v57, %v1904_v57 }
 0x7e1   : > { %3811 = vmatpush3.bf16.msra.mxu0 %v4146_v39  ;;  %3833 = vmatpush3.bf16.msra.mxu1 %v4147_v40  ;;  %v1918_v39 = vpack.c.bf16 %v1902_v36, %v1902_v36  ;;  %v4185_v40 = vld [vmem:[%s4529_s20 + $0x3f0] sm:$0xff]  }
 0x7e2   : > { %3840 = vmatprep.subr.bf16.mxu0 %v4148_v26  ;;  %3862 = vmatprep.subr.bf16.mxu1 %v4149_v27  ;;  %v4187_v26 = vld [vmem:[%s4529_s20 + $0x3b0] sm:$0xff]   ;;  %v4188_v27 = vld [vmem:[%s4529_s20 + $0x368] sm:$0xff]  }
 0x7e4   : > { %3065 = vmatmul.mubr.bf16.vlgmr.msra.gmra.mxu0 %v1909_v47  ;;  %3105 = vmatmul.mubr.bf16.vlgmr.msra.gmra.mxu1 %v1911_v48  ;;  %v4192_v47 = vld [vmem:[%s4529_s20 + $0x360] sm:$0xff]  }
 0x7e5   : > { %3841 = vmatpush3.bf16.msra.mxu0 %v4150_v46  ;;  %3144 = vmatprep.mubr.bf16.mxu0 %v1914_v60  ;;  %v4191_v46 = vld [vmem:[%s4529_s20 + $0x3a8] sm:$0xff]   ;;  %v4193_v48 = vld [vmem:[%s4529_s20 + $0x3e0] sm:$0xff]  }
 0x7e6   : > { %3863 = vmatpush3.bf16.msra.mxu1 %v4151_v59  ;;  %3184 = vmatprep.mubr.bf16.mxu1 %v1916_v63  ;;  %v4194_v59 = vld [vmem:[%s4529_s20 + $0x320] sm:$0xff]   ;;  %v4198_v63 = vld [vmem:[%s4529_s20 + $0x318] sm:$0xff]  }
 0x7e7   : > { %3842 = vmatprep.subr.bf16.mxu0 %v4152_v61  ;;  %3864 = vmatprep.subr.bf16.mxu1 %v4153_v62  ;;  %v4195_v60 = vld [vmem:[%s4529_s20 + $0x3a0] sm:$0xff]   ;;  %v4196_v61 = vld [vmem:[%s4529_s20 + $0x358] sm:$0xff]  }
 0x7e8   : > { %v4197_v62 = vld [vmem:[%s4529_s20 + $0x3d8] sm:$0xff]  }
 0x7e9   : > { %3843 = vmatpush3.bf16.msra.mxu0 %v4154_v0  ;;  %v4199_v0 = vld [vmem:[%s4529_s20 + $0x398] sm:$0xff]  }
 0x7ea   : > { %3865 = vmatpush3.bf16.msra.mxu1 %v4155_v1  ;;  %3844 = vmatprep.subr.bf16.mxu0 %v4156_v3  ;;  %v4200_v1 = vld [vmem:[%s4529_s20 + $0x350] sm:$0xff]  }
 0x7eb   : > { %3866 = vmatprep.subr.bf16.mxu1 %v4157_v5  ;;  %v4201_v3 = vld [vmem:[%s4529_s20 + $0x3d0] sm:$0xff]  }
 0x7ec   : > { %v4202_v5 = vld [vmem:[%s4529_s20 + $0x310] sm:$0xff]  }
 0x7ed   : > { %3845 = vmatpush3.bf16.msra.mxu0 %v4158_v6  ;;  %v4203_v6 = vld [vmem:[%s4529_s20 + $0x390] sm:$0xff]  }
 0x7ee   : > { %3867 = vmatpush3.bf16.msra.mxu1 %v4159_v7  ;;  %3846 = vmatprep.subr.bf16.mxu0 %v4160_v4  ;;  %v4204_v7 = vld [vmem:[%s4529_s20 + $0x348] sm:$0xff]  }
 0x7ef   : > { %3868 = vmatprep.subr.bf16.mxu1 %v4161_v11  ;;  %v4205_v4 = vld [vmem:[%s4529_s20 + $0x3c8] sm:$0xff]  }
 0x7f0   : > { %v4206_v11 = vld [vmem:[%s4529_s20 + $0x308] sm:$0xff]  }
 0x7f1   : > { %3847 = vmatpush3.bf16.msra.mxu0 %v4162_v12  ;;  %v4207_v12 = vld [vmem:[%s4529_s20 + $0x388] sm:$0xff]  }
 0x7f2   : > { %3869 = vmatpush3.bf16.msra.mxu1 %v4163_v13  ;;  %3848 = vmatprep.subr.bf16.mxu0 %v4164_v14  ;;  %v4208_v13 = vld [vmem:[%s4529_s20 + $0x340] sm:$0xff]  }
 0x7f3   : > { %3870 = vmatprep.subr.bf16.mxu1 %v4165_v15  ;;  %v4209_v14 = vld [vmem:[%s4529_s20 + $0x3c0] sm:$0xff]  }
 0x7f4   : > { %v4210_v15 = vld [vmem:[%s4529_s20 + $0x300] sm:$0xff]  }
 0x7f5   : > { %3849 = vmatpush3.bf16.msra.mxu0 %v4166_v16  ;;  %v1901_v16 = vmax.f32 %v4819_v18, 0.0 }
 0x7f6   : > { %3871 = vmatpush3.bf16.msra.mxu1 %v4167_v17  ;;  %3850 = vmatprep.subr.bf16.mxu0 %v4168_v10  ;;  %v4211_v17 = vld [vmem:[%s4529_s20 + $0x380] sm:$0xff]   ;;  %v1903_v10 = vmax.f32 %v4822_v19, 0.0 }
 0x7f7   : > { %3872 = vmatprep.subr.bf16.mxu1 %v4169_v22  ;;  %v1917_v22 = vpack.c.bf16 %v1901_v16, %v1901_v16 }
 0x7f9   : > { %3851 = vmatpush3.bf16.msra.mxu0 %v4170_v23  ;;  %v1919_v23 = vpack.c.bf16 %v1903_v10, %v1903_v10 }
 0x7fa   : > { %3873 = vmatpush3.bf16.msra.mxu1 %v4171_v25  ;;  %3852 = vmatprep.subr.bf16.mxu0 %v4172_v28  ;;  %v3590_v28 = vld [vmem:[%s630_s18] ss:$0 sm:$0xff] }
 0x7fb   : > { %3874 = vmatprep.subr.bf16.mxu1 %v4173_v53 }
 0x7fd   : > { %3853 = vmatpush3.bf16.msra.mxu0 %v4174_v31 }
 0x7fe   : > { %3875 = vmatpush3.bf16.msra.mxu1 %v4175_v55  ;;  %3854 = vmatprep.subr.bf16.mxu0 %v4176_v33 }
 0x7ff   : > { %3876 = vmatprep.subr.bf16.mxu1 %v4177_v51 }
 0x801   : > { %3855 = vmatpush3.bf16.msra.mxu0 %v4178_v8 }
 0x802   : > { %3877 = vmatpush3.bf16.msra.mxu1 %v4179_v49  ;;  %3884 = vmatprep.subr.bf16.mxu0 %v4180_v56 }
 0x803   : > { %3906 = vmatprep.subr.bf16.mxu1 %v4181_v2 }
 0x804   : > { %3145 = vmatmul.mubr.bf16.vlgmr.msra.gmra.mxu0 %v1913_v37 }
 0x805   : > { %3185 = vmatmul.mubr.bf16.vlgmr.msra.gmra.mxu1 %v1915_v38  ;;  %3885 = vmatpush3.bf16.msra.mxu0 %v4182_v20 }
 0x806   : > { %3224 = vmatprep.mubr.bf16.mxu0 %v1918_v39  ;;  %3907 = vmatpush3.bf16.msra.mxu1 %v4183_v21 }
 0x807   : > { %3264 = vmatprep.mubr.bf16.mxu1 %v1920_v42  ;;  %3886 = vmatprep.subr.bf16.mxu0 %v4184_v58 }
 0x808   : > { %3908 = vmatprep.subr.bf16.mxu1 %v4185_v40 }
 0x809   : > { %3887 = vmatpush3.bf16.msra.mxu0 %v4186_v43 }
 0x80a   : > { %3909 = vmatpush3.bf16.msra.mxu1 %v4187_v26  ;;  %3888 = vmatprep.subr.bf16.mxu0 %v4188_v27 }
 0x80b   : > { %3910 = vmatprep.subr.bf16.mxu1 %v4189_v44 }
 0x80d   : > { %3889 = vmatpush3.bf16.msra.mxu0 %v4190_v45 }
 0x80e   : > { %3911 = vmatpush3.bf16.msra.mxu1 %v4191_v46  ;;  %3890 = vmatprep.subr.bf16.mxu0 %v4192_v47 }
 0x80f   : > { %3912 = vmatprep.subr.bf16.mxu1 %v4193_v48 }
 0x811   : > { %3891 = vmatpush3.bf16.msra.mxu0 %v4194_v59 }
 0x812   : > { %3913 = vmatpush3.bf16.msra.mxu1 %v4195_v60  ;;  %3892 = vmatprep.subr.bf16.mxu0 %v4196_v61 }
 0x813   : > { %3914 = vmatprep.subr.bf16.mxu1 %v4197_v62 }
 0x815   : > { %3893 = vmatpush3.bf16.msra.mxu0 %v4198_v63 }
 0x816   : > { %3915 = vmatpush3.bf16.msra.mxu1 %v4199_v0  ;;  %3894 = vmatprep.subr.bf16.mxu0 %v4200_v1 }
 0x817   : > { %3916 = vmatprep.subr.bf16.mxu1 %v4201_v3 }
 0x819   : > { %3895 = vmatpush3.bf16.msra.mxu0 %v4202_v5 }
 0x81a   : > { %3917 = vmatpush3.bf16.msra.mxu1 %v4203_v6  ;;  %3896 = vmatprep.subr.bf16.mxu0 %v4204_v7 }
 0x81b   : > { %3918 = vmatprep.subr.bf16.mxu1 %v4205_v4 }
 0x81d   : > { %3897 = vmatpush3.bf16.msra.mxu0 %v4206_v11 }
 0x81e   : > { %3919 = vmatpush3.bf16.msra.mxu1 %v4207_v12  ;;  %3898 = vmatprep.subr.bf16.mxu0 %v4208_v13 }
 0x81f   : > { %3920 = vmatprep.subr.bf16.mxu1 %v4209_v14 }
 0x821   : > { %3899 = vmatpush3.bf16.msra.mxu0 %v4210_v15 }
 0x822   : > { %3921 = vmatpush3.bf16.msra.mxu1 %v4211_v17 }
 0x824   : > { %3225 = vmatmul.mubr.bf16.vlgmr.msra.gmra.mxu0 %v1917_v22  ;;  %v3720_v22 = vld [vmem:[%s642_s26] ss:$0 sm:$0xff] }
 0x825   : > { %3265 = vmatmul.mubr.bf16.vlgmr.msra.gmra.mxu1 %v1919_v23 }
 0x884   : > { %v3768_v24 = vpop.f32.mrf.mxu0  ;;  %v3790_v25 = vpop.f32.mrf.mxu1 }
 0x886   : > { %v3769_v18 = vpop.f32.mrf.mxu0  ;;  %v3791_v29 = vpop.f32.mrf.mxu1 }
 0x887   : > { %v3770_v53 = vadd.f32 %v3769_v18, %v3768_v24  ;;  %v3792_v30 = vadd.f32 %v3791_v29, %v3790_v25 }
 0x888   : > { %v3771_v54 = vpop.f32.mrf.mxu0  ;;  %v3793_v19 = vpop.f32.mrf.mxu1 }
 0x889   : > { %v2987_v31 = vadd.f32 %v3770_v53, %v3590_v28 }
 0x88a   : > { %v3772_v32 = vpop.f32.mrf.mxu0  ;;  %v3794_v55 = vpop.f32.mrf.mxu1 }
 0x88b   : > { %v3027_v33 = vadd.f32 %v3792_v30, %v2987_v31 }
 0x8a4   : > { %v3812_v34 = vpop.f32.mrf.mxu0  ;;  %v3834_v51 = vpop.f32.mrf.mxu1 }
 0x8a6   : > { %v3813_v50 = vpop.f32.mrf.mxu0  ;;  %v3835_v52 = vpop.f32.mrf.mxu1 }
 0x8a7   : > { %v3814_v58 = vadd.f32 %v3813_v50, %v3812_v34  ;;  %v3836_v40 = vadd.f32 %v3835_v52, %v3834_v51 }
 0x8a8   : > { %v3815_v8 = vpop.f32.mrf.mxu0  ;;  %v3837_v9 = vpop.f32.mrf.mxu1 }
 0x8a9   : > { %v3067_v39 = vadd.f32 %v3814_v58, %v3027_v33 }
 0x8aa   : > { %v3816_v49 = vpop.f32.mrf.mxu0  ;;  %v3838_v56 = vpop.f32.mrf.mxu1 }
 0x8ab   : > { %v3107_v43 = vadd.f32 %v3836_v40, %v3067_v39 }
 0x8c4   : > { %v3856_v35 = vpop.f32.mrf.mxu0 }
 0x8c5   : > { %v3878_v2 = vpop.f32.mrf.mxu1 }
 0x8c6   : > { %v3857_v36 = vpop.f32.mrf.mxu0 }
 0x8c7   : > { %v3879_v57 = vpop.f32.mrf.mxu1  ;;  %v3858_v42 = vadd.f32 %v3857_v36, %v3856_v35 }
 0x8c8   : > { %v3859_v20 = vpop.f32.mrf.mxu0  ;;  %v3880_v44 = vadd.f32 %v3879_v57, %v3878_v2 }
 0x8c9   : > { %v3881_v37 = vpop.f32.mrf.mxu1  ;;  %v3147_v26 = vadd.f32 %v3858_v42, %v3107_v43 }
 0x8ca   : > { %v3860_v21 = vpop.f32.mrf.mxu0 }
 0x8cb   : > { %v3882_v38 = vpop.f32.mrf.mxu1  ;;  %v3187_v47 = vadd.f32 %v3880_v44, %v3147_v26 }
 0x8e4   : > { %v3900_v27 = vpop.f32.mrf.mxu0 }
 0x8e5   : > { %v3922_v45 = vpop.f32.mrf.mxu1 }
 0x8e6   : > { %v3901_v46 = vpop.f32.mrf.mxu0 }
 0x8e7   : > { %v3902_v48 = vadd.f32 %v3901_v46, %v3900_v27  ;;  %v3923_v59 = vpop.f32.mrf.mxu1 }
 0x8e8   : > { %v3903_v60 = vpop.f32.mrf.mxu0  ;;  %v3924_v62 = vadd.f32 %v3923_v59, %v3922_v45 }
 0x8e9   : > { %v3227_v61 = vadd.f32 %v3902_v48, %v3187_v47  ;;  %v3925_v63 = vpop.f32.mrf.mxu1 }
 0x8ea   : > { %v3904_v0 = vpop.f32.mrf.mxu0 }
 0x8eb   : > { %v3267_v1 = vadd.f32 %v3924_v62, %v3227_v61  ;;  %v3926_v3 = vpop.f32.mrf.mxu1 }
 0x8ed   : > { %v3272_v5 = vadd.f32 %v3267_v1, %v4673_v41  ;;  %v3719_v41 = vld [vmem:[%s639_s5] ss:$0 sm:$0xff] }
 0x8ef   : > { %v3275_v6 = vsel %vm676_vm2, %v3272_v5, 0.0 }
 0x8f0   : > { %3276 = vadd.xlane.f32.xlu0 %v3275_v6 }
 0x979   : > { %v3277_v7 = vpop.xlane.xlu0 %3276 }
 0x97a   : > { %v3278_v4 = vmul.f32 0.03125, %v3277_v7 }
 0x97c   : > { %v3279_v11 = vsub.f32 %v3272_v5, %v3278_v4 }
 0x97e   : > { %v3280_v12 = vmul.f32 %v3279_v11, %v3279_v11 }
 0x980   : > { %v3281_v13 = vsel %vm676_vm2, %v3280_v12, 0.0 }
 0x981   : > { %3282 = vadd.xlane.f32.xlu0 %v3281_v13 }
 0xa0a   : > { %v3283_v14 = vpop.xlane.xlu0 %3282 }
 0xa0b   : > { %v3284_v15 = vmul.f32 0.03125, %v3283_v14 }
 0xa0d   : > { %v3285_v16 = vadd.f32 1e-05, %v3284_v15 }
 0xa0f   : > { %4230 = vrsqrt.f32 %v3285_v16 }
 0xa1c   : > { %v4231_v17 = vpop.eup %4230 }
 0xa1d   : > { %v3287_v10 = vmul.f32 %v4231_v17, %v3279_v11 }
 0xa1f   : > { %v3294_v23 = vmul.f32 %v3719_v41, %v3287_v10  ;;  %3306 = sbr.rel (%p3721_p1) target bundleno = 2597 (0xa25), region = 80 }
 0xa21   : > { %v3301_v24 = vadd.f32 %v3720_v22, %v3294_v23 }
 0xa23   : > { %3302 = vst.msk [vmem:[#allocation2] sm:$0xff] %vm676_vm2, %v3301_v24 }
 0xa24   : > { %3307 = vst.msk [vmem:[%s593_s7] sm:$0xff] %vm676_vm2, %v3301_v24 }
 0xa25 PF: > { %s5070_s15 = sld [smem:[#allocation10_spill]]  ;;  %s3322_s21 = sshll.u32 %s593_s7, 4  ;;  %s3323_s21 = int_to_ptr.vmem [resolvable:$true] %s3322_s21 }
 0xa26   : > { %s5071_s5 = sld [smem:[#allocation7_spill]]  ;;  %s4232_s28 = scalar_lea.vmem %s3323_s21, 128 }
 0xa27   : > { %s5073_s26 = sld [smem:[#allocation27_spill]]  ;;  %p4233_p2 = scmp.ne.s32.totalorder %s3323_s21, %s4232_s28 }
 0xa28   : > { %s4343_s14 = smov [#allocation3]  }
 0xa29   : > { %p4234_p4 = pnand %p4233_p2, %p4463_p3  ;;  %s4236_s25 = sshll.u32 %s4343_s14, 4  ;;  %s4237_s25 = int_to_ptr.vmem [resolvable:$false] %s4236_s25 }
 0xa2a   : > { %s4238_s0 = scalar_lea.vmem %s4237_s25, 256  ;;  %p4239_p6 = scmp.lt.s32.totalorder %s3323_s21, %s4237_s25 }
 0xa2b   : > { %s3723_s3 = sshll.u32 %s5070_s15, 7  ;;  %p4235_p5 = pneg %p4234_p4 }
 0xa2c   : > { %s5075_s16 = sand.u32 1, %s5071_s5   ;;  %p4240_p7 = scmp.lt.s32.totalorder %s4238_s0, %s4232_s28 }
 0xa2d   : > { %s5074_s12 = smov %s5073_s26  ;;  %s3320_s29 = scalar_lea.hbm %s5073_s26, %s3723_s3 }
 0xa2e   : > { %s3309_s19 = scalar_lea.sflag [#allocation4], %s5075_s16  ;;  %p4241_p8 = por %p4240_p7, %p4239_p6 }
 0xa30   : > { %p4242_p10 = pnand %p4241_p8, %p4235_p5 }
 0xa32   : > { %4245 = shalt.err (!%p4242_p10)
}
 0xa33   : > { %s4246_s27 = scalar_lea.hbm %s3320_s29, 128  ;;  %s4250_s20 = scalar_lea.hbm %s5074_s12, 256 }
 0xa34   : > { %p4247_p11 = scmp.ne.s32.totalorder %s3320_s29, %s4246_s27  ;;  %p4251_p0 = scmp.lt.s32.totalorder %s3320_s29, %s5074_s12 }
 0xa35   : > { %p4252_p1 = scmp.lt.s32.totalorder %s4250_s20, %s4246_s27 }
 0xa36   : > { %p4248_p12 = pnand %p4247_p11, %p4463_p3 }
 0xa37   : > { %p4253_p2 = por %p4252_p1, %p4251_p0 }
 0xa38   : > { %p4249_p13 = pneg %p4248_p12 }
 0xa3a   : > { %p4254_p4 = pnand %p4253_p2, %p4249_p13 }
 0xa3c   : > { %4257 = shalt.err (!%p4254_p4)
}
 0xa3d   : > { %3992 = dma.vmem_to_hbm [thread:$0]  (%p4463_p3), %s3323_s21, 128, %s3320_s29, %s3309_s19  }
 0xa3e PF: > { %s5076_s22 = sld [smem:[#allocation13_spill]] }
 0xa3f   : > { %s5077_s24 = sld [smem:[#allocation6_spill]] }
 0xa44   : > { %p3998_p5 = scmp.ge.s32.totalorder %s5076_s22, 2 }
 0xa45   : > { %s3334_s15 = sand.u32 1, %s5077_s24  }
 0xa46   : > { %p3995_p6 = pnand %p3998_p5, %p4473_p9  ;;  %s3335_s5 = scalar_lea.sflag [#allocation4], %s3334_s15 }
 0xa48   : > { %p3996_p7 = pneg %p3995_p6 }
 0xa4a   : > { %4291 = dma.done.wait (%p3996_p7), %s3335_s5, 128  }
 0xa4b   : > { %4293 = vsyncadd (%p3996_p7), %s3335_s5, 4294967168  ;;  %s26_s15 = sadd.s32 1, %s5076_s22   ;;  %s5079_s25 = sld [smem:[#allocation7_spill]] }
 0xa4c   : > { %p23_p8 = scmp.ge.s32.totalorder %s26_s15, 6   ;;  %s5080_s26 = sld [smem:[#allocation8_spill]] }
 0xa4d   : > { %s5081_s27 = sld [smem:[#allocation18_spill]] }
 0xa4e   : > { %s5082_s28 = sld [smem:[#allocation11_spill]]  ;;  %25 = sbr.rel (!%p23_p8) target bundleno = 14 (0xe), region = 151 }
 0xa4f   : > { %s5083_s29 = sld [smem:[#allocation12_spill]] }
 0xa50   : > { %s5084_s30 = sld [smem:[#allocation14_spill]] }
 0xa51   : > { %s5085_s14 = sld [smem:[#allocation16_spill]] }
 0xa53   :  { %3340 = vsyncpa [#allocation4], 1 }
 0xa54   :  { %3342 = vsyncpa [#allocation4 + $0x1], 1 }

</bundles_post_ra>
